<compile_context>
chip_gen: v7x
topology: tpu7x:2x2x1
jax: 0.10.0
libtpu: 0.0.40
codegen_flags: <defaults>
</compile_context>

<pallas_src>
import functools
import math

import jax
import jax.numpy as jnp
from jax.experimental import pallas as pl
from jax.experimental.pallas import tpu as pltpu


def _self_attention_kernel(
    x_ref,       # (1, T, D)             f32
    gamma_ref,   # (1, D)                f32
    beta_ref,    # (1, D)                f32
    wqkv_ref,    # (D, 2*H*hd + H*vhd)   bf16, scale folded into Q slice
    bqkv_ref,    # (1, 2*H*hd + H*vhd)   f32,  scale folded into Q slice
    wz_ref,      # (H*vhd, D)            bf16
    bz_ref,      # (1, D)                f32
    o_ref,       # (1, T, D)
    *,
    num_heads: int,
    head_dim: int,
    v_head_dim: int,
):
    x = x_ref[0]  # (T, D), f32
    T, D = x.shape
    H, hd, vhd = num_heads, head_dim, v_head_dim
    mhd = H * hd
    mvd = H * vhd

    # ---- LayerNorm (f32 VPU math; eps = 1e-5, elementwise affine) ----
    mean = jnp.mean(x, axis=-1, keepdims=True)
    var = jnp.mean((x - mean) ** 2, axis=-1, keepdims=True)
    xn = (x - mean) * jax.lax.rsqrt(var + 1e-5)
    xn = xn * gamma_ref[...] + beta_ref[...]

    # ---- fused Q/K/V projection: one wide bf16 MXU pass, f32 accumulation ----
    qkv = jnp.dot(xn.astype(jnp.bfloat16), wqkv_ref[...],
                  preferred_element_type=jnp.float32) + bqkv_ref[...]
    # 1/sqrt(head_dim) was folded into the Q slice of wqkv/bqkv at prep time.
    q3 = qkv[:, :mhd].astype(jnp.bfloat16).reshape(T, H, hd)
    k3 = qkv[:, mhd:2 * mhd].astype(jnp.bfloat16).reshape(T, H, hd)
    v3 = qkv[:, 2 * mhd:].astype(jnp.bfloat16).reshape(T, H, vhd)

    # ---- head-batched attention: bf16 MXU operands, f32 softmax ----
    s = jnp.einsum('thd,Thd->htT', q3, k3,
                   preferred_element_type=jnp.float32)          # (H, T, T) f32
    s = s - jnp.max(s, axis=-1, keepdims=True)
    p = jnp.exp(s)
    # Exact reciprocal (not approx) per the numerics review.
    p = p * pl.reciprocal(jnp.sum(p, axis=-1, keepdims=True), approx=False)
    # Output directly in (t, h, d) layout so the head-major flatten below is a
    # plain reshape (matches torch's 'b t h d -> b t (h d)').
    zh = jnp.einsum('htT,Thd->thd', p.astype(jnp.bfloat16), v3,
                    preferred_element_type=jnp.float32)          # (T, H, vhd)

    # ---- output projection: single (T, H*vhd) @ (H*vhd, D) MXU pass ----
    zflat = zh.reshape(T, mvd).astype(jnp.bfloat16)
    z = jnp.dot(zflat, wz_ref[...],
                preferred_element_type=jnp.float32) + bz_ref[...]  # (T, D) f32
    o_ref[0] = z.astype(o_ref.dtype)


def prepare_params(params, *, num_heads, head_dim, v_head_dim,
                   compute_dtype=jnp.bfloat16):
    """One-time parameter preparation (call once, NOT per forward):
       * fuse Wq|Wk|Wv and bq|bk|bv,
       * fold 1/sqrt(head_dim) into the Q slice,
       * cast matmul weights to bf16 (MXU fast path, half the DMA bytes),
       * keep LayerNorm affine params and biases in f32."""
    del v_head_dim  # layout already head-major in wv/wz
    scale = head_dim ** (-0.5)
    wqkv = jnp.concatenate(
        [params["wq"] * scale, params["wk"], params["wv"]], axis=1)
    bqkv = jnp.concatenate(
        [params["bq"] * scale, params["bk"], params["bv"]], axis=1)
    return dict(
        gamma=params["gamma"].astype(jnp.float32),
        beta=params["beta"].astype(jnp.float32),
        wqkv=wqkv.astype(compute_dtype),
        bqkv=bqkv.astype(jnp.float32),
        wz=params["wz"].astype(compute_dtype),   # (H*vhd, D), kept 2-D
        bz=params["bz"].astype(jnp.float32),
    )


def self_attention(embed, prepared, *, num_heads, head_dim, v_head_dim,
                   vmem_limit_bytes=48 * 1024 * 1024):
    """embed: [B, T, D] float32. prepared: output of prepare_params()."""
    B, T, D = embed.shape
    mhd = num_heads * head_dim
    mvd = num_heads * v_head_dim

    kernel = functools.partial(
        _self_attention_kernel,
        num_heads=num_heads, head_dim=head_dim, v_head_dim=v_head_dim)

    def build(single_buffer_consts):
        def const_spec(shape):
            kwargs = {}
            if single_buffer_consts:
                # Constant index_map across the grid -> no need to double-buffer.
                kwargs["pipeline_mode"] = pl.Buffered(1)
            return pl.BlockSpec(shape, lambda b: tuple(0 for _ in shape), **kwargs)

        per_batch = pl.BlockSpec((1, T, D), lambda b: (b, 0, 0))
        return pl.pallas_call(
            kernel,
            out_shape=jax.ShapeDtypeStruct((B, T, D), embed.dtype),
            grid_spec=pltpu.PrefetchScalarGridSpec(
                num_scalar_prefetch=0,
                grid=(B,),
                in_specs=[
                    per_batch,                       # embed
                    const_spec((1, D)),              # gamma
                    const_spec((1, D)),              # beta
                    const_spec((D, 2 * mhd + mvd)),  # fused Wqkv (bf16)
                    const_spec((1, 2 * mhd + mvd)),  # fused bqkv (f32)
                    const_spec((mvd, D)),            # Wz (bf16, 2-D)
                    const_spec((1, D)),              # bz
                ],
                out_specs=per_batch,
            ),
            compiler_params=pltpu.CompilerParams(
                dimension_semantics=("parallel",),
                vmem_limit_bytes=vmem_limit_bytes,
            ),
        )

    args = (embed, prepared["gamma"], prepared["beta"], prepared["wqkv"],
            prepared["bqkv"], prepared["wz"], prepared["bz"])
    try:
        return build(True)(*args)
    except Exception:
        # pl.Buffered(1) not accepted by this jax build: fall back to default
        # (double-buffered) specs; constant index_map still means a single DMA.
        return build(False)(*args)


def init_params(key, embed_dim, num_heads, head_dim, v_head_dim):
    """Deterministic init mimicking nn.Linear (uniform +/- 1/sqrt(fan_in))."""
    mhd = num_heads * head_dim
    mvd = num_heads * v_head_dim
    ks = jax.random.split(key, 8)

    def linear(kw, kb, fan_in, fan_out):
        bound = 1.0 / math.sqrt(fan_in)
        w = jax.random.uniform(kw, (fan_in, fan_out), jnp.float32, -bound, bound)
        b = jax.random.uniform(kb, (1, fan_out), jnp.float32, -bound, bound)
        return w, b

    wq, bq = linear(ks[0], ks[1], embed_dim, mhd)
    wk, bk = linear(ks[2], ks[3], embed_dim, mhd)
    wv, bv = linear(ks[4], ks[5], embed_dim, mvd)
    wz, bz = linear(ks[6], ks[7], mvd, embed_dim)
    return dict(
        gamma=jnp.ones((1, embed_dim), jnp.float32),
        beta=jnp.zeros((1, embed_dim), jnp.float32),
        wq=wq, bq=bq, wk=wk, bk=bk, wv=wv, bv=bv, wz=wz, bz=bz,
    )


def _reference(embed, params, *, num_heads, head_dim, v_head_dim):
    """Pure-JAX f32 reference for validation (mirrors the PyTorch module)."""
    x = embed
    mean = jnp.mean(x, axis=-1, keepdims=True)
    var = jnp.mean((x - mean) ** 2, axis=-1, keepdims=True)
    xn = (x - mean) / jnp.sqrt(var + 1e-5)
    xn = xn * params["gamma"][0] + params["beta"][0]

    q = xn @ params["wq"] + params["bq"][0]
    k = xn @ params["wk"] + params["bk"][0]
    v = xn @ params["wv"] + params["bv"][0]
    B, T, _ = q.shape
    q = q.reshape(B, T, num_heads, head_dim)
    k = k.reshape(B, T, num_heads, head_dim)
    v = v.reshape(B, T, num_heads, v_head_dim)
    score = jnp.einsum("bthd,bThd->bhtT", q, k) * head_dim ** (-0.5)
    p = jax.nn.softmax(score, axis=-1)
    z = jnp.einsum("bhtT,bThd->bthd", p, v).reshape(B, T, num_heads * v_head_dim)
    return z @ params["wz"] + params["bz"][0]


if __name__ == "__main__":
    B, T, D = 2, 8, 32           # batch, seq, embed_dim
    num_heads, head_dim = 4, 16  # v_head_dim defaults to head_dim
    v_head_dim = head_dim

    key = jax.random.PRNGKey(0)
    k_x, k_p = jax.random.split(key)
    embed = jax.random.normal(k_x, (B, T, D), jnp.float32)
    params = init_params(k_p, D, num_heads, head_dim, v_head_dim)
    prepared = prepare_params(params, num_heads=num_heads,
                              head_dim=head_dim, v_head_dim=v_head_dim)

    out = self_attention(embed, prepared, num_heads=num_heads,
                         head_dim=head_dim, v_head_dim=v_head_dim)
    out = jax.block_until_ready(out)

    ref = _reference(embed, params, num_heads=num_heads,
                     head_dim=head_dim, v_head_dim=v_head_dim)
    assert out.shape == (B, T, D)
    max_err = float(jnp.max(jnp.abs(out - ref)))
    # Tolerance covers bf16 MXU operands (f32 accumulation); softmax uses an
    # exact reciprocal, so bf16 rounding is the only deviation from the
    # f32 reference.
    assert max_err < 5e-2, f"mismatch vs reference (max abs err {max_err})"
    print("KERNEL_OK")
</pallas_src>

<mosaic_0001>
module attributes {stable_mosaic.version = 11 : i64} {
  func.func @_self_attention_kernel(%arg0: i32, %arg1: memref<1x8x32xf32, #tpu.memory_space<vmem>>, %arg2: memref<1x32xf32, #tpu.memory_space<vmem>>, %arg3: memref<1x32xf32, #tpu.memory_space<vmem>>, %arg4: memref<32x192xbf16, #tpu.memory_space<vmem>>, %arg5: memref<1x192xf32, #tpu.memory_space<vmem>>, %arg6: memref<64x32xbf16, #tpu.memory_space<vmem>>, %arg7: memref<1x32xf32, #tpu.memory_space<vmem>>, %arg8: memref<1x8x32xf32, #tpu.memory_space<vmem>>) attributes {dimension_semantics = [#tpu.dimension_semantics<parallel>], iteration_bounds = array<i64: 2>, scalar_prefetch = 0 : i64, scratch_operands = 0 : i64, tpu.core_type = #tpu.core_type<tc>, window_params = [{transform_indices = @transform_0, window_bounds = array<i64: 1, 8, 32>}, {pipeline_mode = #tpu.pipeline_mode<synchronous>, transform_indices = @transform_1, window_bounds = array<i64: 1, 32>}, {pipeline_mode = #tpu.pipeline_mode<synchronous>, transform_indices = @transform_2, window_bounds = array<i64: 1, 32>}, {pipeline_mode = #tpu.pipeline_mode<synchronous>, transform_indices = @transform_3, window_bounds = array<i64: 32, 192>}, {pipeline_mode = #tpu.pipeline_mode<synchronous>, transform_indices = @transform_4, window_bounds = array<i64: 1, 192>}, {pipeline_mode = #tpu.pipeline_mode<synchronous>, transform_indices = @transform_5, window_bounds = array<i64: 64, 32>}, {pipeline_mode = #tpu.pipeline_mode<synchronous>, transform_indices = @transform_6, window_bounds = array<i64: 1, 32>}, {transform_indices = @transform_7, window_bounds = array<i64: 1, 8, 32>}]} {
    %c0 = arith.constant 0 : index
    %c0_0 = arith.constant 0 : index
    %c0_1 = arith.constant 0 : index
    %0 = vector.load %arg1[%c0, %c0_0, %c0_1] : memref<1x8x32xf32, #tpu.memory_space<vmem>>, vector<1x8x32xf32>
    %1 = vector.shape_cast %0 : vector<1x8x32xf32> to vector<8x32xf32>
    %cst = arith.constant dense<0.000000e+00> : vector<8xf32>
    %2 = vector.multi_reduction <add>, %1, %cst [1] : vector<8x32xf32> to vector<8xf32>
    %3 = vector.shape_cast %2 : vector<8xf32> to vector<8x1xf32>
    %cst_2 = arith.constant 3.200000e+01 : f32
    %4 = vector.broadcast %cst_2 : f32 to vector<8x1xf32>
    %5 = arith.divf %3, %4 : vector<8x1xf32>
    %6 = vector.broadcast %5 : vector<8x1xf32> to vector<8x32xf32>
    %7 = arith.subf %1, %6 : vector<8x32xf32>
    %8 = arith.mulf %7, %7 : vector<8x32xf32>
    %cst_3 = arith.constant dense<0.000000e+00> : vector<8xf32>
    %9 = vector.multi_reduction <add>, %8, %cst_3 [1] : vector<8x32xf32> to vector<8xf32>
    %10 = vector.shape_cast %9 : vector<8xf32> to vector<8x1xf32>
    %cst_4 = arith.constant 3.200000e+01 : f32
    %11 = vector.broadcast %cst_4 : f32 to vector<8x1xf32>
    %12 = arith.divf %10, %11 : vector<8x1xf32>
    %13 = vector.broadcast %5 : vector<8x1xf32> to vector<8x32xf32>
    %14 = arith.subf %1, %13 : vector<8x32xf32>
    %cst_5 = arith.constant 9.99999974E-6 : f32
    %15 = vector.broadcast %cst_5 : f32 to vector<8x1xf32>
    %16 = arith.addf %12, %15 : vector<8x1xf32>
    %17 = math.rsqrt %16 : vector<8x1xf32>
    %18 = vector.broadcast %17 : vector<8x1xf32> to vector<8x32xf32>
    %19 = arith.mulf %14, %18 : vector<8x32xf32>
    %c0_6 = arith.constant 0 : index
    %c0_7 = arith.constant 0 : index
    %20 = vector.load %arg2[%c0_6, %c0_7] : memref<1x32xf32, #tpu.memory_space<vmem>>, vector<1x32xf32>
    %21 = vector.broadcast %20 : vector<1x32xf32> to vector<8x32xf32>
    %22 = arith.mulf %19, %21 : vector<8x32xf32>
    %c0_8 = arith.constant 0 : index
    %c0_9 = arith.constant 0 : index
    %23 = vector.load %arg3[%c0_8, %c0_9] : memref<1x32xf32, #tpu.memory_space<vmem>>, vector<1x32xf32>
    %24 = vector.broadcast %23 : vector<1x32xf32> to vector<8x32xf32>
    %25 = arith.addf %22, %24 : vector<8x32xf32>
    %26 = arith.truncf %25 : vector<8x32xf32> to vector<8x32xbf16>
    %c0_10 = arith.constant 0 : index
    %c0_11 = arith.constant 0 : index
    %27 = vector.load %arg4[%c0_10, %c0_11] : memref<32x192xbf16, #tpu.memory_space<vmem>>, vector<32x192xbf16>
    %cst_12 = arith.constant dense<0.000000e+00> : vector<8x192xf32>
    %28 = tpu.matmul %26, %27, %cst_12 {dimension_numbers = #tpu.dot_dimension_numbers<[1], [0], [0], [1], [0, 0, 1, 1], [], []>} : vector<8x32xbf16>, vector<32x192xbf16>, vector<8x192xf32> -> vector<8x192xf32>
    %c0_13 = arith.constant 0 : index
    %c0_14 = arith.constant 0 : index
    %29 = vector.load %arg5[%c0_13, %c0_14] : memref<1x192xf32, #tpu.memory_space<vmem>>, vector<1x192xf32>
    %30 = vector.broadcast %29 : vector<1x192xf32> to vector<8x192xf32>
    %31 = arith.addf %28, %30 : vector<8x192xf32>
    %32 = vector.extract_strided_slice %31 {offsets = [0, 0], sizes = [8, 64], strides = [1, 1]} : vector<8x192xf32> to vector<8x64xf32>
    %33 = arith.truncf %32 : vector<8x64xf32> to vector<8x64xbf16>
    %34 = vector.shape_cast %33 : vector<8x64xbf16> to vector<8x4x16xbf16>
    %35 = vector.extract_strided_slice %31 {offsets = [0, 64], sizes = [8, 64], strides = [1, 1]} : vector<8x192xf32> to vector<8x64xf32>
    %36 = arith.truncf %35 : vector<8x64xf32> to vector<8x64xbf16>
    %37 = vector.shape_cast %36 : vector<8x64xbf16> to vector<8x4x16xbf16>
    %38 = vector.extract_strided_slice %31 {offsets = [0, 128], sizes = [8, 64], strides = [1, 1]} : vector<8x192xf32> to vector<8x64xf32>
    %39 = arith.truncf %38 : vector<8x64xf32> to vector<8x64xbf16>
    %40 = vector.shape_cast %39 : vector<8x64xbf16> to vector<8x4x16xbf16>
    "tpu.trace_start"() <{level = 10 : i32, message = "thd,Thd->htT"}> : () -> ()
    %cst_15 = arith.constant dense<0.000000e+00> : vector<4x8x8xf32>
    %41 = tpu.matmul %34, %37, %cst_15 {dimension_numbers = #tpu.dot_dimension_numbers<[2], [2], [0], [0], [0, 1, 0, 0, 1, 0], [1], [1]>} : vector<8x4x16xbf16>, vector<8x4x16xbf16>, vector<4x8x8xf32> -> vector<4x8x8xf32>
    "tpu.trace_stop"() : () -> ()
    %cst_16 = arith.constant dense<0xFF800000> : vector<4x8xf32>
    %42 = vector.multi_reduction <maximumf>, %41, %cst_16 [2] : vector<4x8x8xf32> to vector<4x8xf32>
    %43 = vector.shape_cast %42 : vector<4x8xf32> to vector<4x8x1xf32>
    %44 = vector.broadcast %43 : vector<4x8x1xf32> to vector<4x8x8xf32>
    %45 = arith.subf %41, %44 : vector<4x8x8xf32>
    %46 = math.exp %45 : vector<4x8x8xf32>
    %cst_17 = arith.constant dense<0.000000e+00> : vector<4x8xf32>
    %47 = vector.multi_reduction <add>, %46, %cst_17 [2] : vector<4x8x8xf32> to vector<4x8xf32>
    %48 = vector.shape_cast %47 : vector<4x8xf32> to vector<4x8x1xf32>
    %49 = tpu.reciprocal %48 : vector<4x8x1xf32> -> vector<4x8x1xf32>
    %50 = vector.broadcast %49 : vector<4x8x1xf32> to vector<4x8x8xf32>
    %51 = arith.mulf %46, %50 : vector<4x8x8xf32>
    %52 = arith.truncf %51 : vector<4x8x8xf32> to vector<4x8x8xbf16>
    "tpu.trace_start"() <{level = 10 : i32, message = "htT,Thd->thd"}> : () -> ()
    %cst_18 = arith.constant dense<0.000000e+00> : vector<4x16x8xf32>
    %53 = tpu.matmul %40, %52, %cst_18 {dimension_numbers = #tpu.dot_dimension_numbers<[0], [2], [2], [1], [0, 1, 0, 2, 1, 1], [1], [0]>} : vector<8x4x16xbf16>, vector<4x8x8xbf16>, vector<4x16x8xf32> -> vector<4x16x8xf32>
    %54 = tpu.transpose %53, [2, 0, 1] : vector<4x16x8xf32> -> vector<8x4x16xf32>
    "tpu.trace_stop"() : () -> ()
    %55 = vector.shape_cast %54 : vector<8x4x16xf32> to vector<8x64xf32>
    %56 = arith.truncf %55 : vector<8x64xf32> to vector<8x64xbf16>
    %c0_19 = arith.constant 0 : index
    %c0_20 = arith.constant 0 : index
    %57 = vector.load %arg6[%c0_19, %c0_20] : memref<64x32xbf16, #tpu.memory_space<vmem>>, vector<64x32xbf16>
    %cst_21 = arith.constant dense<0.000000e+00> : vector<8x32xf32>
    %58 = tpu.matmul %56, %57, %cst_21 {dimension_numbers = #tpu.dot_dimension_numbers<[1], [0], [0], [1], [0, 0, 1, 1], [], []>} : vector<8x64xbf16>, vector<64x32xbf16>, vector<8x32xf32> -> vector<8x32xf32>
    %c0_22 = arith.constant 0 : index
    %c0_23 = arith.constant 0 : index
    %59 = vector.load %arg7[%c0_22, %c0_23] : memref<1x32xf32, #tpu.memory_space<vmem>>, vector<1x32xf32>
    %60 = vector.broadcast %59 : vector<1x32xf32> to vector<8x32xf32>
    %61 = arith.addf %58, %60 : vector<8x32xf32>
    %c0_24 = arith.constant 0 : index
    %c0_25 = arith.constant 0 : index
    %c0_26 = arith.constant 0 : index
    %62 = vector.load %arg8[%c0_24, %c0_25, %c0_26] : memref<1x8x32xf32, #tpu.memory_space<vmem>>, vector<1x8x32xf32>
    %63 = vector.shape_cast %62 : vector<1x8x32xf32> to vector<8x32xf32>
    %64 = vector.shape_cast %61 : vector<8x32xf32> to vector<1x8x32xf32>
    tpu.vector_store %arg8[%c0_24, %c0_25, %c0_26], %64 {strides = array<i32>} : memref<1x8x32xf32, #tpu.memory_space<vmem>>, vector<1x8x32xf32>,
    return
  }
  func.func @transform_0(%arg0: i32) -> (i32, i32, i32) {
    %c0_i32 = arith.constant 0 : i32
    %c0_i32_0 = arith.constant 0 : i32
    %c0_i32_1 = arith.constant 0 : i32
    return %arg0, %c0_i32, %c0_i32_0 : i32, i32, i32
  }
  func.func @transform_1(%arg0: i32) -> (i32, i32) {
    %c0_i32 = arith.constant 0 : i32
    %c0_i32_0 = arith.constant 0 : i32
    %c0_i32_1 = arith.constant 0 : i32
    return %c0_i32, %c0_i32_0 : i32, i32
  }
  func.func @transform_2(%arg0: i32) -> (i32, i32) {
    %c0_i32 = arith.constant 0 : i32
    %c0_i32_0 = arith.constant 0 : i32
    %c0_i32_1 = arith.constant 0 : i32
    return %c0_i32, %c0_i32_0 : i32, i32
  }
  func.func @transform_3(%arg0: i32) -> (i32, i32) {
    %c0_i32 = arith.constant 0 : i32
    %c0_i32_0 = arith.constant 0 : i32
    %c0_i32_1 = arith.constant 0 : i32
    return %c0_i32, %c0_i32_0 : i32, i32
  }
  func.func @transform_4(%arg0: i32) -> (i32, i32) {
    %c0_i32 = arith.constant 0 : i32
    %c0_i32_0 = arith.constant 0 : i32
    %c0_i32_1 = arith.constant 0 : i32
    return %c0_i32, %c0_i32_0 : i32, i32
  }
  func.func @transform_5(%arg0: i32) -> (i32, i32) {
    %c0_i32 = arith.constant 0 : i32
    %c0_i32_0 = arith.constant 0 : i32
    %c0_i32_1 = arith.constant 0 : i32
    return %c0_i32, %c0_i32_0 : i32, i32
  }
  func.func @transform_6(%arg0: i32) -> (i32, i32) {
    %c0_i32 = arith.constant 0 : i32
    %c0_i32_0 = arith.constant 0 : i32
    %c0_i32_1 = arith.constant 0 : i32
    return %c0_i32, %c0_i32_0 : i32, i32
  }
  func.func @transform_7(%arg0: i32) -> (i32, i32, i32) {
    %c0_i32 = arith.constant 0 : i32
    %c0_i32_0 = arith.constant 0 : i32
    %c0_i32_1 = arith.constant 0 : i32
    return %arg0, %c0_i32, %c0_i32_0 : i32, i32, i32
  }
}

module attributes {stable_mosaic.version = 11 : i64} {
  func.func @_self_attention_kernel(%arg0: i32, %arg1: memref<1x8x32xf32, #tpu.memory_space<vmem>>, %arg2: memref<1x32xf32, #tpu.memory_space<vmem>>, %arg3: memref<1x32xf32, #tpu.memory_space<vmem>>, %arg4: memref<32x192xbf16, #tpu.memory_space<vmem>>, %arg5: memref<1x192xf32, #tpu.memory_space<vmem>>, %arg6: memref<64x32xbf16, #tpu.memory_space<vmem>>, %arg7: memref<1x32xf32, #tpu.memory_space<vmem>>, %arg8: memref<1x8x32xf32, #tpu.memory_space<vmem>>) attributes {dimension_semantics = [#tpu.dimension_semantics<parallel>], iteration_bounds = array<i64: 2>, scalar_prefetch = 0 : i64, scratch_operands = 0 : i64, tpu.core_type = #tpu.core_type<tc>, window_params = [{transform_indices = @transform_0, window_bounds = array<i64: 1, 8, 32>}, {pipeline_mode = #tpu.pipeline_mode<synchronous>, transform_indices = @transform_1, window_bounds = array<i64: 1, 32>}, {pipeline_mode = #tpu.pipeline_mode<synchronous>, transform_indices = @transform_2, window_bounds = array<i64: 1, 32>}, {pipeline_mode = #tpu.pipeline_mode<synchronous>, transform_indices = @transform_3, window_bounds = array<i64: 32, 192>}, {pipeline_mode = #tpu.pipeline_mode<synchronous>, transform_indices = @transform_4, window_bounds = array<i64: 1, 192>}, {pipeline_mode = #tpu.pipeline_mode<synchronous>, transform_indices = @transform_5, window_bounds = array<i64: 64, 32>}, {pipeline_mode = #tpu.pipeline_mode<synchronous>, transform_indices = @transform_6, window_bounds = array<i64: 1, 32>}, {transform_indices = @transform_7, window_bounds = array<i64: 1, 8, 32>}]} {
    %c0 = arith.constant 0 : index
    %c0_0 = arith.constant 0 : index
    %c0_1 = arith.constant 0 : index
    %0 = vector.load %arg1[%c0, %c0_0, %c0_1] : memref<1x8x32xf32, #tpu.memory_space<vmem>>, vector<1x8x32xf32>
    %1 = vector.shape_cast %0 : vector<1x8x32xf32> to vector<8x32xf32>
    %cst = arith.constant dense<0.000000e+00> : vector<8xf32>
    %2 = vector.multi_reduction <add>, %1, %cst [1] : vector<8x32xf32> to vector<8xf32>
    %3 = vector.shape_cast %2 : vector<8xf32> to vector<8x1xf32>
    %cst_2 = arith.constant 3.200000e+01 : f32
    %4 = vector.broadcast %cst_2 : f32 to vector<8x1xf32>
    %5 = arith.divf %3, %4 : vector<8x1xf32>
    %6 = vector.broadcast %5 : vector<8x1xf32> to vector<8x32xf32>
    %7 = arith.subf %1, %6 : vector<8x32xf32>
    %8 = arith.mulf %7, %7 : vector<8x32xf32>
    %cst_3 = arith.constant dense<0.000000e+00> : vector<8xf32>
    %9 = vector.multi_reduction <add>, %8, %cst_3 [1] : vector<8x32xf32> to vector<8xf32>
    %10 = vector.shape_cast %9 : vector<8xf32> to vector<8x1xf32>
    %cst_4 = arith.constant 3.200000e+01 : f32
    %11 = vector.broadcast %cst_4 : f32 to vector<8x1xf32>
    %12 = arith.divf %10, %11 : vector<8x1xf32>
    %13 = vector.broadcast %5 : vector<8x1xf32> to vector<8x32xf32>
    %14 = arith.subf %1, %13 : vector<8x32xf32>
    %cst_5 = arith.constant 9.99999974E-6 : f32
    %15 = vector.broadcast %cst_5 : f32 to vector<8x1xf32>
    %16 = arith.addf %12, %15 : vector<8x1xf32>
    %17 = math.rsqrt %16 : vector<8x1xf32>
    %18 = vector.broadcast %17 : vector<8x1xf32> to vector<8x32xf32>
    %19 = arith.mulf %14, %18 : vector<8x32xf32>
    %c0_6 = arith.constant 0 : index
    %c0_7 = arith.constant 0 : index
    %20 = vector.load %arg2[%c0_6, %c0_7] : memref<1x32xf32, #tpu.memory_space<vmem>>, vector<1x32xf32>
    %21 = vector.broadcast %20 : vector<1x32xf32> to vector<8x32xf32>
    %22 = arith.mulf %19, %21 : vector<8x32xf32>
    %c0_8 = arith.constant 0 : index
    %c0_9 = arith.constant 0 : index
    %23 = vector.load %arg3[%c0_8, %c0_9] : memref<1x32xf32, #tpu.memory_space<vmem>>, vector<1x32xf32>
    %24 = vector.broadcast %23 : vector<1x32xf32> to vector<8x32xf32>
    %25 = arith.addf %22, %24 : vector<8x32xf32>
    %26 = arith.truncf %25 : vector<8x32xf32> to vector<8x32xbf16>
    %c0_10 = arith.constant 0 : index
    %c0_11 = arith.constant 0 : index
    %27 = vector.load %arg4[%c0_10, %c0_11] : memref<32x192xbf16, #tpu.memory_space<vmem>>, vector<32x192xbf16>
    %cst_12 = arith.constant dense<0.000000e+00> : vector<8x192xf32>
    %28 = tpu.matmul %26, %27, %cst_12 {dimension_numbers = #tpu.dot_dimension_numbers<[1], [0], [0], [1], [0, 0, 1, 1], [], []>} : vector<8x32xbf16>, vector<32x192xbf16>, vector<8x192xf32> -> vector<8x192xf32>
    %c0_13 = arith.constant 0 : index
    %c0_14 = arith.constant 0 : index
    %29 = vector.load %arg5[%c0_13, %c0_14] : memref<1x192xf32, #tpu.memory_space<vmem>>, vector<1x192xf32>
    %30 = vector.broadcast %29 : vector<1x192xf32> to vector<8x192xf32>
    %31 = arith.addf %28, %30 : vector<8x192xf32>
    %32 = vector.extract_strided_slice %31 {offsets = [0, 0], sizes = [8, 64], strides = [1, 1]} : vector<8x192xf32> to vector<8x64xf32>
    %33 = arith.truncf %32 : vector<8x64xf32> to vector<8x64xbf16>
    %34 = vector.shape_cast %33 : vector<8x64xbf16> to vector<8x4x16xbf16>
    %35 = vector.extract_strided_slice %31 {offsets = [0, 64], sizes = [8, 64], strides = [1, 1]} : vector<8x192xf32> to vector<8x64xf32>
    %36 = arith.truncf %35 : vector<8x64xf32> to vector<8x64xbf16>
    %37 = vector.shape_cast %36 : vector<8x64xbf16> to vector<8x4x16xbf16>
    %38 = vector.extract_strided_slice %31 {offsets = [0, 128], sizes = [8, 64], strides = [1, 1]} : vector<8x192xf32> to vector<8x64xf32>
    %39 = arith.truncf %38 : vector<8x64xf32> to vector<8x64xbf16>
    %40 = vector.shape_cast %39 : vector<8x64xbf16> to vector<8x4x16xbf16>
    "tpu.trace_start"() <{level = 10 : i32, message = "thd,Thd->htT"}> : () -> ()
    %cst_15 = arith.constant dense<0.000000e+00> : vector<4x8x8xf32>
    %41 = tpu.matmul %34, %37, %cst_15 {dimension_numbers = #tpu.dot_dimension_numbers<[2], [2], [0], [0], [0, 1, 0, 0, 1, 0], [1], [1]>} : vector<8x4x16xbf16>, vector<8x4x16xbf16>, vector<4x8x8xf32> -> vector<4x8x8xf32>
    "tpu.trace_stop"() : () -> ()
    %cst_16 = arith.constant dense<0xFF800000> : vector<4x8xf32>
    %42 = vector.multi_reduction <maximumf>, %41, %cst_16 [2] : vector<4x8x8xf32> to vector<4x8xf32>
    %43 = vector.shape_cast %42 : vector<4x8xf32> to vector<4x8x1xf32>
    %44 = vector.broadcast %43 : vector<4x8x1xf32> to vector<4x8x8xf32>
    %45 = arith.subf %41, %44 : vector<4x8x8xf32>
    %46 = math.exp %45 : vector<4x8x8xf32>
    %cst_17 = arith.constant dense<0.000000e+00> : vector<4x8xf32>
    %47 = vector.multi_reduction <add>, %46, %cst_17 [2] : vector<4x8x8xf32> to vector<4x8xf32>
    %48 = vector.shape_cast %47 : vector<4x8xf32> to vector<4x8x1xf32>
    %49 = tpu.reciprocal %48 : vector<4x8x1xf32> -> vector<4x8x1xf32>
    %50 = vector.broadcast %49 : vector<4x8x1xf32> to vector<4x8x8xf32>
    %51 = arith.mulf %46, %50 : vector<4x8x8xf32>
    %52 = arith.truncf %51 : vector<4x8x8xf32> to vector<4x8x8xbf16>
    "tpu.trace_start"() <{level = 10 : i32, message = "htT,Thd->thd"}> : () -> ()
    %cst_18 = arith.constant dense<0.000000e+00> : vector<4x16x8xf32>
    %53 = tpu.matmul %40, %52, %cst_18 {dimension_numbers = #tpu.dot_dimension_numbers<[0], [2], [2], [1], [0, 1, 0, 2, 1, 1], [1], [0]>} : vector<8x4x16xbf16>, vector<4x8x8xbf16>, vector<4x16x8xf32> -> vector<4x16x8xf32>
    %54 = tpu.transpose %53, [2, 0, 1] : vector<4x16x8xf32> -> vector<8x4x16xf32>
    "tpu.trace_stop"() : () -> ()
    %55 = vector.shape_cast %54 : vector<8x4x16xf32> to vector<8x64xf32>
    %56 = arith.truncf %55 : vector<8x64xf32> to vector<8x64xbf16>
    %c0_19 = arith.constant 0 : index
    %c0_20 = arith.constant 0 : index
    %57 = vector.load %arg6[%c0_19, %c0_20] : memref<64x32xbf16, #tpu.memory_space<vmem>>, vector<64x32xbf16>
    %cst_21 = arith.constant dense<0.000000e+00> : vector<8x32xf32>
    %58 = tpu.matmul %56, %57, %cst_21 {dimension_numbers = #tpu.dot_dimension_numbers<[1], [0], [0], [1], [0, 0, 1, 1], [], []>} : vector<8x64xbf16>, vector<64x32xbf16>, vector<8x32xf32> -> vector<8x32xf32>
    %c0_22 = arith.constant 0 : index
    %c0_23 = arith.constant 0 : index
    %59 = vector.load %arg7[%c0_22, %c0_23] : memref<1x32xf32, #tpu.memory_space<vmem>>, vector<1x32xf32>
    %60 = vector.broadcast %59 : vector<1x32xf32> to vector<8x32xf32>
    %61 = arith.addf %58, %60 : vector<8x32xf32>
    %c0_24 = arith.constant 0 : index
    %c0_25 = arith.constant 0 : index
    %c0_26 = arith.constant 0 : index
    %62 = vector.load %arg8[%c0_24, %c0_25, %c0_26] : memref<1x8x32xf32, #tpu.memory_space<vmem>>, vector<1x8x32xf32>
    %63 = vector.shape_cast %62 : vector<1x8x32xf32> to vector<8x32xf32>
    %64 = vector.shape_cast %61 : vector<8x32xf32> to vector<1x8x32xf32>
    tpu.vector_store %arg8[%c0_24, %c0_25, %c0_26], %64 {strides = array<i32>} : memref<1x8x32xf32, #tpu.memory_space<vmem>>, vector<1x8x32xf32>,
    return
  }
  func.func @transform_0(%arg0: i32) -> (i32, i32, i32) {
    %c0_i32 = arith.constant 0 : i32
    %c0_i32_0 = arith.constant 0 : i32
    %c0_i32_1 = arith.constant 0 : i32
    return %arg0, %c0_i32, %c0_i32_0 : i32, i32, i32
  }
  func.func @transform_1(%arg0: i32) -> (i32, i32) {
    %c0_i32 = arith.constant 0 : i32
    %c0_i32_0 = arith.constant 0 : i32
    %c0_i32_1 = arith.constant 0 : i32
    return %c0_i32, %c0_i32_0 : i32, i32
  }
  func.func @transform_2(%arg0: i32) -> (i32, i32) {
    %c0_i32 = arith.constant 0 : i32
    %c0_i32_0 = arith.constant 0 : i32
    %c0_i32_1 = arith.constant 0 : i32
    return %c0_i32, %c0_i32_0 : i32, i32
  }
  func.func @transform_3(%arg0: i32) -> (i32, i32) {
    %c0_i32 = arith.constant 0 : i32
    %c0_i32_0 = arith.constant 0 : i32
    %c0_i32_1 = arith.constant 0 : i32
    return %c0_i32, %c0_i32_0 : i32, i32
  }
  func.func @transform_4(%arg0: i32) -> (i32, i32) {
    %c0_i32 = arith.constant 0 : i32
    %c0_i32_0 = arith.constant 0 : i32
    %c0_i32_1 = arith.constant 0 : i32
    return %c0_i32, %c0_i32_0 : i32, i32
  }
  func.func @transform_5(%arg0: i32) -> (i32, i32) {
    %c0_i32 = arith.constant 0 : i32
    %c0_i32_0 = arith.constant 0 : i32
    %c0_i32_1 = arith.constant 0 : i32
    return %c0_i32, %c0_i32_0 : i32, i32
  }
  func.func @transform_6(%arg0: i32) -> (i32, i32) {
    %c0_i32 = arith.constant 0 : i32
    %c0_i32_0 = arith.constant 0 : i32
    %c0_i32_1 = arith.constant 0 : i32
    return %c0_i32, %c0_i32_0 : i32, i32
  }
  func.func @transform_7(%arg0: i32) -> (i32, i32, i32) {
    %c0_i32 = arith.constant 0 : i32
    %c0_i32_0 = arith.constant 0 : i32
    %c0_i32_1 = arith.constant 0 : i32
    return %arg0, %c0_i32, %c0_i32_0 : i32, i32, i32
  }
}

</mosaic_0001>

<bundles_post_ra>
// kernel: tpu_custom_call.1
= control target key start
LH: loop header
LB: loop body
LE: loop exit
PB: predicated region body
PF: predicated region fallthrough
CT: control target
= control target key end

     0   :  { %12 = vsyncpa [#allocation3], 0  ;;  %s2122_s0 = inlined_call_operand.vmem [shape: f32[2,8,32], index: 0, kind: input, shape index: {}]   ;;  %s2123_s1 = inlined_call_operand.hbm [shape: f32[1,32], index: 1, kind: input, shape index: {}]   ;;  %s2124_s2 = inlined_call_operand.hbm [shape: f32[1,32], index: 2, kind: input, shape index: {}]   ;;  %s2125_s3 = inlined_call_operand.vmem [shape: bf16[32,192], index: 3, kind: input, shape index: {}]   ;;  %s2126_s4 = inlined_call_operand.vmem [shape: f32[1,192], index: 4, kind: input, shape index: {}]   ;;  %s2127_s5 = inlined_call_operand.vmem [shape: bf16[64,32], index: 5, kind: input, shape index: {}]   ;;  %s2128_s6 = inlined_call_operand.vmem [shape: f32[1,32], index: 6, kind: input, shape index: {}]   ;;  %s2129_s7 = inlined_call_operand.hbm [shape: f32[2,8,32], index: 7, kind: output, shape index: {}]  }
   0x1   :  { %13 = vsyncpa [#allocation6], 0 }
   0x2   :  { %14 = vsyncpa [#allocation4], 0 }
   0x3   :  { %16 = vsyncpa [#allocation4 + $0x1], 0  ;;  %s1844_s24 = smov 0   ;;  %s1846_s25 = smov 0  }
   0x4   :  { %s1848_s26 = smov 0   ;;  %s1850_s27 = smov 0  }
   0x5 LB: > { %s1865_s28 = sadd.s32 4294967295, %s1787_s27   ;;  %s1443_s29 = sadd.s32 4294967294, %s1787_s27   ;;  %s1787_s27 = sphi %s1850_s27, %s2147_s27   ;;  %s1783_s26 = sphi %s1848_s26, %s2146_s26   ;;  %s1779_s25 = sphi %s1846_s25, %s2145_s25   ;;  %s1775_s24 = sphi %s1844_s24, %s2144_s24  }
   0x6   : > { %s1869_s30 = sadd.s32 1, %s1787_s27   ;;  %s181_s8 = sadd.s32 1, %s1783_s26 }
   0x7   : > { %s178_s9 = ssub.s32 %s1787_s27, %s1869_s30  ;;  %p191_p0 = scmp.ne.s32.totalorder %s1783_s26, %s1779_s25 }
   0x8   : > { %p179_p1 = scmp.eq.s32.totalorder %s178_s9, 0  ;;  %p192_p2 = scmp.eq.s32.totalorder %s1865_s28, 1 }
   0x9   : > { %p197_p3 = scmp.ne.s32.totalorder %s1779_s25, %s1775_s24  ;;  %p198_p4 = scmp.eq.s32.totalorder %s1443_s29, 1 }
   0xa   : > { %s1880_s10 = scalar_select %p179_p1, %s1783_s26, %s181_s8  }
   0xb   : > { %p1882_p5 = por %p192_p2, %p191_p0  ;;  %p1886_p6 = por %p198_p4, %p197_p3 }
   0xc   : > { %p1444_p7 = scmp.ge.s32.totalorder %s1787_s27, 1  ;;  %p205_p8 = scmp.lt.s32.totalorder %s1787_s27, 3 }
   0xd   : > { %s2133_s11 = scalar_select %p1882_p5, 1, 0 }
   0xe   : > { %s2134_s12 = scalar_select %p1886_p6, 1, 0 }
   0xf   : > { %p2130_p9 = scmp.eq.s32.totalorder %s1865_s28, 0  ;;  %p1893_p10 = pnand %p1444_p7, %p205_p8 }
  0x10   : > { %s1789_s14 = smov [#allocation2]   ;;  %s1790_s16 = smov [#allocation5]  }
  0x11   : > { %s2135_s13 = scalar_select %p1893_p10, 1, 0 }
  0x12   : > { %s218_s15 = sshll.u32 %s1789_s14, 4  ;;  %p1571_p11 = pneg %p1893_p10  ;;  %s219_s15 = int_to_ptr.vmem [resolvable:$true] %s218_s15 }
  0x13   : > { %s229_s17 = sshll.u32 %s1790_s16, 4  ;;  %s1661_s21 = scalar_lea.hbm %s2123_s1, 16  ;;  %s1905_s17 = int_to_ptr.vmem [resolvable:$true] %s229_s17 }
  0x14   : > { %p1901_p12 = pnand %p2130_p9, %p1571_p11  ;;  %p1662_p13 = scmp.ne.s32.totalorder %s2123_s1, %s1661_s21 }
  0x15   : > { %p1668_p3 = scmp.lt.u32.totalorder %s1661_s21, %s2123_s1 }
  0x16   : > { %p1663_p0 = pneg %p1901_p12 }
  0x18   : > { %p1664_p1 = pnand %p1663_p0, %p1662_p13 }
  0x1a   : > { %p1665_p2 = pneg %p1664_p1 }
  0x1c   : > { %p1670_p4 = pnand %p1668_p3, %p1665_p2 }
  0x1e   : > { %1673 = shalt.err (!%p1670_p4)
}
  0x1f   : > { %s1674_s9 = scalar_lea.vmem %s219_s15, 16  ;;  %s1681_s14 = scalar_lea.vmem %s219_s15, 32 }
  0x20   : > { %p1675_p7 = scmp.ne.s32.totalorder %s219_s15, %s1674_s9  ;;  %p1682_p9 = scmp.lt.s32.totalorder %s219_s15, %s219_s15 }
  0x21   : > { %p1683_p6 = scmp.lt.s32.totalorder %s1681_s14, %s1674_s9 }
  0x22   : > { %p1677_p8 = pnand %p1675_p7, %p1663_p0 }
  0x23   : > { %p1684_p5 = por %p1683_p6, %p1682_p9 }
  0x24   : > { %p1678_p11 = pneg %p1677_p8 }
  0x26   : > { %p1685_p10 = pnand %p1684_p5, %p1678_p11 }
  0x28   : > { %1688 = shalt.err (!%p1685_p10)
}
  0x29   : > { %1574 = dma.hbm_to_vmem [thread:$0]  (!%p1901_p12), %s2123_s1, 16, %s219_s15, [#allocation3]  }
  0x2a   : > { %s1689_s22 = scalar_lea.hbm %s2124_s2, 16 }
  0x2b   : > { %p1690_p13 = scmp.ne.s32.totalorder %s2124_s2, %s1689_s22  ;;  %p1696_p9 = scmp.lt.u32.totalorder %s1689_s22, %s2124_s2 }
  0x2d   : > { %p1692_p6 = pnand %p1690_p13, %p1663_p0 }
  0x2f   : > { %p1693_p5 = pneg %p1692_p6 }
  0x31   : > { %p1698_p10 = pnand %p1696_p9, %p1693_p5 }
  0x33   : > { %1701 = shalt.err (!%p1698_p10)
}
  0x34   : > { %s1702_s15 = scalar_lea.vmem %s1905_s17, 16  ;;  %s1709_s14 = scalar_lea.vmem %s1905_s17, 32 }
  0x35   : > { %p1703_p1 = scmp.ne.s32.totalorder %s1905_s17, %s1702_s15  ;;  %p1710_p4 = scmp.lt.s32.totalorder %s1905_s17, %s1905_s17 }
  0x36   : > { %p1711_p7 = scmp.lt.s32.totalorder %s1709_s14, %s1702_s15 }
  0x37   : > { %p1705_p2 = pnand %p1703_p1, %p1663_p0 }
  0x38   : > { %p1712_p8 = por %p1711_p7, %p1710_p4 }
  0x39   : > { %p1706_p3 = pneg %p1705_p2 }
  0x3b   : > { %p1713_p11 = pnand %p1712_p8, %p1706_p3 }
  0x3d   : > { %1716 = shalt.err (!%p1713_p11)
}
  0x3e   : > { %1577 = dma.hbm_to_vmem [thread:$0]  (!%p1901_p12), %s2124_s2, 16, %s1905_s17, [#allocation6]  }
  0x3f   : > { %p2137_p13 = scmp.ne.s32.totalorder %s2135_s13, 0 }
  0x40   : > { %p2138_p0 = scmp.eq.s32.totalorder (!%p2137_p13), %s1865_s28, 0 }
  0x41   : > { %261 = sbr.rel (%p2137_p13) target bundleno = 2287 (0x8ef), region = 48 }
  0x48   : > { %1762 = dma.done.wait (%p2138_p0), [#allocation3], 16   ;;  %p2139_p6 = pmov %p2138_p0 }
  0x49   : > { %p2140_p5 = pmov %p2138_p0 }
  0x4a   : > { %1764 = vsyncadd (%p2139_p6), [#allocation3], 4294967280 }
  0x4b   : > { %1766 = dma.done.wait (%p2140_p5), [#allocation6], 16   ;;  %p2141_p9 = pmov %p2138_p0 }
  0x4c   : > { %p296_p10 = scmp.lt.s32.totalorder %s1865_s28, 1  ;;  %vm302_vm0 = vcmask 261120   ;;  %v1633_v7 = vld [vmem:[%s2125_s3 + $0x4] ss:$8 sps:$4 sm:$0xff]   ;;  %v1635_v8 = vld [vmem:[%s2125_s3] ss:$8 sps:$4 sm:$0xff]   ;;  %v340_v22 = vlaneseq }
  0x4d   : > { %1768 = vsyncadd (%p2141_p9), [#allocation6], 4294967280  ;;  %v1636_v9 = vld [vmem:[%s2125_s3 + $0x14] ss:$8 sps:$4 sm:$0xff]   ;;  %373 = vmatprep.subr.bf16.mxu0 %v1633_v7  ;;  %v1791_v10 = vmov 0   ;;  %s1793_s20 = smov 112  }
  0x4e   : > { %s297_s18 = scalar_select %p296_p10, %s1865_s28, 1  ;;  %405 = vmatprep.mubr.bf16.mxu0 %v1791_v10  ;;  %374 = vmatpush1.bf16.msra.mxu0 %v1635_v8  ;;  %v1638_v11 = vld [vmem:[%s2125_s3 + $0x10] ss:$8 sps:$4 sm:$0xff]   ;;  %v1453_v16 = vld [vmem:[#allocation2] ss:$0 sm:$0xff]  ;;  %v1985_v23 = vshrl.u32 %v340_v22, 7 }
  0x4f   : > { %375 = vmatprep.subr.bf16.mxu0 %v1636_v9  ;;  %v1454_v18 = vld [vmem:[#allocation5] ss:$0 sm:$0xff]  ;;  %v1991_v25 = vld [vmem:[%s2126_s4] sm:$0x3]  ;;  %s1794_s13 = smov 96   ;;  %v1796_v33 = vmov 0.0  }
  0x50   : > { %s1452_s17 = sshll.u32 %s297_s18, 3  ;;  %v342_v24 = vsub.s32 0, %v1985_v23  ;;  %1501 = vmatprep.subr.bf16.mxu1 %v1796_v33  ;;  %vm1797_vm1 = vmmov 0   ;;  %vm509_vm2 = vcmask 130048   ;;  %vm682_vm3 = vcmask 64512   ;;  %s1800_s19 = smov 32  }
  0x51   : > { %s299_s21 = scalar_lea.vmem %s2122_s0, %s1452_s17  ;;  %s1792_s17 = smov 80   ;;  %1503 = vmatprep.mubr.msk.bf16.mxu1 %vm1797_vm1, %v1796_v33  ;;  %v346_v60 = vsub.s32 1, %v1985_v23  ;;  %vm1261_vm4 = vcmask 392192   ;;  %vm1303_vm5 = vcmask 523264  }
  0x52   : > { %v301_v0 = vld [vmem:[%s299_s21] sm:$0xff]  ;;  %376 = vmatpush1.bf16.msra.mxu0 %v1638_v11  ;;  %v343_v26 = vrot.slane %v1991_v25, %v342_v24  ;;  %s1795_s21 = smov 64   ;;  %s1801_s18 = smov 16  }
  0x53   : > { %v303_v1 = vsel %vm302_vm0, %v301_v0, 0.0  ;;  %1525 = vmatprep.subr.bf16.mxu0 %v1796_v33  ;;  %v347_v62 = vrot.slane %v1991_v25, %v346_v60  ;;  %s1477_s23 = sshll.u32 %s1865_s28, 7  ;;  %p2142_p1 = scmp.ne.s32.totalorder %s2133_s11, 0 }
  0x54   : > { %304 = vadd.xlane.f32.xlu0 %v303_v1  ;;  %s2079_s14 = scalar_lea.hbm %s2129_s7, %s1477_s23 }
  0xe1   : > { %v305_v2 = vpop.xlane.xlu0 %304 }
  0xe2   : > { %v307_v3 = vmul.f32 0.03125, %v305_v2 }
  0xe4   : > { %v308_v4 = vsub.f32 %v301_v0, %v307_v3 }
  0xe6   : > { %v309_v5 = vmul.f32 %v308_v4, %v308_v4 }
  0xe8   : > { %v310_v6 = vsel %vm302_vm0, %v309_v5, 0.0 }
  0xe9   : > { %311 = vadd.xlane.f32.xlu0 %v310_v6 }
 0x176   : > { %v312_v12 = vpop.xlane.xlu0 %311 }
 0x177   : > { %v313_v13 = vmul.f32 0.03125, %v312_v12 }
 0x179   : > { %v314_v14 = vadd.f32 1e-05, %v313_v13 }
 0x17b   : > { %1643 = vrsqrt.f32 %v314_v14 }
 0x185   : > { %v1644_v15 = vpop.eup %1643 }
 0x186   : > { %v316_v17 = vmul.f32 %v1644_v15, %v308_v4 }
 0x188   : > { %v324_v19 = vmul.f32 %v1453_v16, %v316_v17 }
 0x18a   : > { %v332_v20 = vadd.f32 %v1454_v18, %v324_v19 }
 0x18c   : > { %v333_v21 = vpack.c.bf16 %v332_v20, %v332_v20 }
 0x18e   : > { %1459 = vmatmul.mubr.msk.bf16.vlgmr.msra.gmra.mrb[0].mxu0 %vm302_vm0, %v333_v21 }
 0x18f   : > { %1527 = vmatprep.mubr.msk.bf16.mxu0 %vm1797_vm1, %v1796_v33 }
 0x261   : > { %v407_v27 = vpop.f32.mrb[0].mxu0 }
 0x262   : > { %v408_v28 = vadd.f32 %v407_v27, %v343_v26  ;;  %v1994_v29 = vpop.f32.mrb[1].mxu0 }
 0x263   : > { %v411_v30 = vpop.f32.mrb[2].mxu0  ;;  %v410_v3 = vadd.f32 %v1994_v29, %v347_v62 }
 0x264   : > { %v414_v31 = vpack.c.bf16 %v408_v28, %v408_v28  ;;  %v412_v32 = vpop.f32.mrb[3].mxu0 }
 0x265   : > { %v422_v4 = vpack.c.bf16 %v410_v3, %v410_v3 }
 0x266   : > { %420 = vrot.lane.b32.xlu0 %v414_v31, %s1792_s17  ;;  %416 = vrot.lane.b32.xlu1 %v414_v31, %s1793_s20 }
 0x26a   : > { %418 = vrot.lane.b32.xlu1 %v414_v31, %s1794_s13 }
 0x26e   : > { %433 = vrot.lane.b32.xlu1 %v414_v31, %s1795_s21 }
 0x2d8   : > { %v417_v34 = vpop.permute.xlu1 %416  ;;  %v421_v36 = vpop.permute.xlu0 %420 }
 0x2d9   : > { %435 = vrot.lane.b32.xlu1 %v417_v34, %s1795_s21 }
 0x2dc   : > { %v419_v35 = vpop.permute.xlu1 %418 }
 0x2dd   : > { %437 = vrot.lane.b32.xlu1 %v419_v35, %s1795_s21 }
 0x2e0   : > { %v434_v37 = vpop.permute.xlu1 %433 }
 0x2e1   : > { %439 = vrot.lane.b32.xlu1 %v421_v36, %s1795_s21 }
 0x304   : > { %445 = vxpose.xlu1.c.b16.start.end [1/1] (short) (narrow) %v434_v37, 16 }
 0x34b   : > { %v436_v38 = vpop.permute.xlu1 %435 }
 0x34c   : > { %461 = vxpose.xlu0.c.b16.start.end [1/1] (short) (narrow) %v436_v38, 16 }
 0x34f   : > { %v438_v39 = vpop.permute.xlu1 %437 }
 0x350   : > { %477 = vxpose.xlu1.c.b16.start.end [1/1] (short) (narrow) %v438_v39, 16 }
 0x353   : > { %v440_v40 = vpop.permute.xlu1 %439 }
 0x354   : > { %493 = vxpose.xlu0.c.b16.start.end [1/1] (short) (narrow) %v440_v40, 16 }
 0x36a   : > { %v453_v41 = vpop.trf.xlu1 }
 0x36b   : > { %1502 = vmatpush3.bf16.msra.mxu1 %v453_v41 }
 0x36c   : > { %1507 = vmatprep.subr.bf16.mxu1 %v1796_v33 }
 0x36e   : > { %1504 = vmatmul.mubr.msk.bf16.vlgmr.msra.gmra.mrb[0].mxu1 %vm509_vm2, %v414_v31 }
 0x36f   : > { %1509 = vmatprep.mubr.msk.bf16.mxu1 %vm1797_vm1, %v1796_v33 }
 0x3b2   : > { %v469_v42 = vpop.trf.xlu0 }
 0x3b3   : > { %1508 = vmatpush3.bf16.msra.mxu1 %v469_v42 }
 0x3b4   : > { %1513 = vmatprep.subr.bf16.mxu1 %v1796_v33 }
 0x3b6   : > { %1510 = vmatmul.mubr.msk.bf16.vlgmr.msra.gmra.mrb[4].mxu1 %vm509_vm2, %v417_v34  ;;  %v485_v43 = vpop.trf.xlu1 }
 0x3b7   : > { %1514 = vmatpush3.bf16.msra.mxu1 %v485_v43  ;;  %1515 = vmatprep.mubr.msk.bf16.mxu1 %vm1797_vm1, %v1796_v33 }
 0x3b8   : > { %1519 = vmatprep.subr.bf16.mxu1 %v1796_v33 }
 0x3ba   : > { %v501_v44 = vpop.trf.xlu0 }
 0x3be   : > { %1516 = vmatmul.mubr.msk.bf16.vlgmr.msra.gmra.mrb[8].mxu1 %vm509_vm2, %v419_v35 }
 0x3bf   : > { %1520 = vmatpush3.bf16.msra.mxu1 %v501_v44  ;;  %1521 = vmatprep.mubr.msk.bf16.mxu1 %vm1797_vm1, %v1796_v33 }
 0x3c0   : > { %1531 = vmatprep.subr.bf16.mxu1 %v1796_v33 }
 0x3c6   : > { %1522 = vmatmul.mubr.msk.bf16.vlgmr.msra.gmra.mrb[12].mxu1 %vm509_vm2, %v421_v36 }
 0x3c7   : > { %1533 = vmatprep.mubr.msk.bf16.mxu1 %vm1797_vm1, %v1796_v33 }
 0x441   : > { %v547_v45 = vpop.f32.mrb[0].mxu1 }
 0x442   : > { %v1505_v46 = vpop.f32.mrb[1].mxu1  ;;  %v683_v47 = vsel %vm682_vm3, %v547_v45, -inf }
 0x443   : > { %684 = vmax.xlane.f32.xlu1 %v683_v47  ;;  %v550_v48 = vpop.f32.mrb[2].mxu1 }
 0x444   : > { %v1506_v49 = vpop.f32.mrb[3].mxu1 }
 0x489   : > { %v590_v50 = vpop.f32.mrb[4].mxu1 }
 0x48a   : > { %v1511_v51 = vpop.f32.mrb[5].mxu1  ;;  %v686_v52 = vsel %vm682_vm3, %v590_v50, -inf }
 0x48b   : > { %687 = vmax.xlane.f32.xlu0 %v686_v52  ;;  %v593_v53 = vpop.f32.mrb[6].mxu1 }
 0x48c   : > { %v1512_v54 = vpop.f32.mrb[7].mxu1 }
 0x491   : > { %v633_v55 = vpop.f32.mrb[8].mxu1 }
 0x492   : > { %v1517_v56 = vpop.f32.mrb[9].mxu1  ;;  %v689_v57 = vsel %vm682_vm3, %v633_v55, -inf }
 0x493   : > { %690 = vmax.xlane.f32.xlu1 %v689_v57  ;;  %v636_v58 = vpop.f32.mrb[10].mxu1 }
 0x494   : > { %v1518_v59 = vpop.f32.mrb[11].mxu1 }
 0x499   : > { %v676_v61 = vpop.f32.mrb[12].mxu1 }
 0x49a   : > { %v1523_v63 = vpop.f32.mrb[13].mxu1  ;;  %v692_v0 = vsel %vm682_vm3, %v676_v61, -inf }
 0x49b   : > { %693 = vmax.xlane.f32.xlu0 %v692_v0  ;;  %v679_v1 = vpop.f32.mrb[14].mxu1 }
 0x49c   : > { %v1524_v2 = vpop.f32.mrb[15].mxu1 }
 0x4a4   : > { %424 = vrot.lane.b32.xlu1 %v422_v4, %s1793_s20  ;;  %s293_s20 = sand.u32 1, %s1779_s25  }
 0x4a5   : > { %s1349_s28 = scalar_lea.sflag [#allocation4], %s293_s20 }
 0x4a8   : > { %430 = vrot.lane.b32.xlu1 %v422_v4, %s1792_s17  ;;  %s1802_s17 = smov 48  }
 0x4d0   : > { %v685_v5 = vpop.xlane.xlu1 %684 }
 0x4d1   : > { %v695_v6 = vsub.f32 %v547_v45, %v685_v5 }
 0x4d3   : > { %v699_v7 = vmul.f32 1.442695, %v695_v6  ;;  %v1639_v6 = vld [vmem:[%s2127_s5] sm:$0xff]  }
 0x4d5   : > { %1645 = vpow2.f32 %v699_v7  ;;  %v1640_v7 = vld [vmem:[%s2127_s5 + $0x8] sm:$0xff]  }
 0x4df   : > { %v1646_v8 = vpop.eup %1645 }
 0x4e0   : > { %v707_v9 = vsel %vm682_vm3, %v1646_v8, 0.0 }
 0x4e1   : > { %708 = vadd.xlane.f32.xlu0 %v707_v9  ;;  %v1798_v9 = vmov 1983009808  }
 0x518   : > { %v688_v10 = vpop.xlane.xlu0 %687 }
 0x519   : > { %v696_v11 = vsub.f32 %v590_v50, %v688_v10  ;;  %v1114_v10 = vunpack.c.l.s4 %v1798_v9 }
 0x51b   : > { %v701_v12 = vmul.f32 1.442695, %v696_v11  ;;  %v1799_v11 = vmov 1934713408  }
 0x51d   : > { %1647 = vpow2.f32 %v701_v12  ;;  %v1146_v12 = vunpack.c.l.s4 %v1799_v11 }
 0x520   : > { %v691_v13 = vpop.xlane.xlu1 %690 }
 0x521   : > { %v697_v14 = vsub.f32 %v633_v55, %v691_v13  ;;  %v1115_v13 = vunpack.c.0.s8 %v1114_v10 }
 0x523   : > { %v703_v15 = vmul.f32 1.442695, %v697_v14 }
 0x524   : > { %v425_v31 = vpop.permute.xlu1 %424 }
 0x525   : > { %1649 = vpow2.f32 %v703_v15  ;;  %v1147_v15 = vunpack.c.0.s8 %v1146_v12 }
 0x527   : > { %v1648_v16 = vpop.eup %1647 }
 0x528   : > { %v710_v17 = vsel %vm682_vm3, %v1648_v16, 0.0  ;;  %v694_v20 = vpop.xlane.xlu0 %693  ;;  %v431_v34 = vpop.permute.xlu1 %430 }
 0x529   : > { %711 = vadd.xlane.f32.xlu0 %v710_v17  ;;  %v698_v21 = vsub.f32 %v676_v61, %v694_v20  ;;  %v1118_v17 = vsub.s32 %v1115_v13, %v1985_v23 }
 0x52b   : > { %v705_v22 = vmul.f32 1.442695, %v698_v21 }
 0x52d   : > { %1651 = vpow2.f32 %v705_v22 }
 0x52f   : > { %v1650_v18 = vpop.eup %1649 }
 0x530   : > { %v713_v19 = vsel %vm682_vm3, %v1650_v18, 0.0 }
 0x531   : > { %714 = vadd.xlane.f32.xlu1 %v713_v19 }
 0x537   : > { %v1652_v24 = vpop.eup %1651 }
 0x538   : > { %v716_v25 = vsel %vm682_vm3, %v1652_v24, 0.0 }
 0x53f   : > { %427 = vrot.lane.b32.xlu0 %v422_v4, %s1794_s13  ;;  %s1451_s13 = sshll.u32 %s293_s20, 3 }
 0x540   : > { %s295_s29 = scalar_lea.vmem [#allocation7], %s1451_s13 }
 0x541   : > { %s1362_s8 = sshll.u32 %s295_s29, 4  ;;  %s2081_s8 = int_to_ptr.vmem [resolvable:$true] %s1362_s8 }
 0x542   : > { %s1717_s16 = scalar_lea.vmem %s2081_s8, 128 }
 0x543   : > { %p1718_p12 = scmp.ne.s32.totalorder %s2081_s8, %s1717_s16 }
 0x545   : > { %p1719_p2 = pnand %p1718_p12, %p2142_p1 }
 0x547   : > { %p1720_p3 = pneg %p1719_p2 }
 0x55e   : > { %717 = vadd.xlane.f32.xlu0 %v716_v25  ;;  %731 = vxpose.xlu1.c.b16.start.end [1/1] (short) (narrow) %v422_v4, 16 }
 0x56e   : > { %v709_v26 = vpop.xlane.xlu0 %708 }
 0x56f   : > { %1653 = vrcp.f32 %v709_v26 }
 0x579   : > { %v1654_v27 = vpop.eup %1653 }
 0x57a   : > { %v723_v28 = vmul.f32 %v1654_v27, %v1646_v8 }
 0x57c   : > { %v727_v29 = vpack.c.bf16 %v723_v28, %v723_v28 }
 0x57e   : > { %v799_v30 = vsel %vm682_vm3, %v727_v29, 0  ;;  %v1641_v29 = vld [vmem:[%s2127_s5 + $0x10] sm:$0xff]  }
 0x57f   : > { %1526 = vmatpush3.bf16.xpose.msra.mxu0 %v799_v30 }
 0x580   : > { %1537 = vmatprep.subr.bf16.mxu0 %v1796_v33 }
 0x58b   : > { %747 = vxpose.xlu0.c.b16.start.end [1/1] (short) (narrow) %v425_v31, 16 }
 0x5b6   : > { %v712_v32 = vpop.xlane.xlu0 %711 }
 0x5b7   : > { %1655 = vrcp.f32 %v712_v32 }
 0x5ba   : > { %v428_v35 = vpop.permute.xlu0 %427 }
 0x5bb   : > { %763 = vxpose.xlu1.c.b16.start.end [1/1] (short) (narrow) %v428_v35, 16 }
 0x5be   : > { %v715_v36 = vpop.xlane.xlu1 %714 }
 0x5bf   : > { %1657 = vrcp.f32 %v715_v36  ;;  %779 = vxpose.xlu1.c.b16.start.end [1/1] (short) (narrow) %v431_v34, 16 }
 0x5c1   : > { %v1656_v37 = vpop.eup %1655 }
 0x5c2   : > { %v724_v38 = vmul.f32 %v1656_v37, %v1648_v16 }
 0x5c4   : > { %v728_v39 = vpack.c.bf16 %v724_v38, %v724_v38  ;;  %v739_v40 = vpop.trf.xlu1 }
 0x5c5   : > { %1528 = vmatmul.mubr.msk.bf16.vlgmr.msra.gmra.mrb[4].mxu0 %vm682_vm3, %v739_v40 }
 0x5c6   : > { %v846_v41 = vsel %vm682_vm3, %v728_v39, 0  ;;  %1539 = vmatprep.mubr.msk.bf16.mxu0 %vm1797_vm1, %v1796_v33 }
 0x5c7   : > { %1532 = vmatpush3.bf16.xpose.msra.mxu1 %v846_v41 }
 0x5c8   : > { %1543 = vmatprep.subr.bf16.mxu1 %v1796_v33 }
 0x5c9   : > { %v1658_v42 = vpop.eup %1657 }
 0x5ca   : > { %v725_v43 = vmul.f32 %v1658_v42, %v1650_v18 }
 0x5cc   : > { %v729_v44 = vpack.c.bf16 %v725_v43, %v725_v43 }
 0x5ce   : > { %v893_v45 = vsel %vm682_vm3, %v729_v44, 0 }
 0x5cf   : > { %1538 = vmatpush3.bf16.xpose.msra.mxu0 %v893_v45 }
 0x5d0   : > { %1549 = vmatprep.subr.bf16.mxu0 %v1796_v33 }
 0x5eb   : > { %v718_v46 = vpop.xlane.xlu0 %717 }
 0x5ec   : > { %1659 = vrcp.f32 %v718_v46 }
 0x5f1   : > { %v755_v47 = vpop.trf.xlu0 }
 0x5f2   : > { %1534 = vmatmul.mubr.msk.bf16.vlgmr.msra.gmra.mrb[16].mxu1 %vm682_vm3, %v755_v47 }
 0x5f3   : > { %1545 = vmatprep.mubr.msk.bf16.mxu1 %vm1797_vm1, %v1796_v33 }
 0x5f6   : > { %v1660_v48 = vpop.eup %1659 }
 0x5f7   : > { %v726_v49 = vmul.f32 %v1660_v48, %v1652_v24  ;;  %v1150_v24 = vsub.s32 %v1147_v15, %v1985_v23  ;;  %v1642_v23 = vld [vmem:[%s2127_s5 + $0x18] sm:$0xff]  }
 0x5f9   : > { %v730_v50 = vpack.c.bf16 %v726_v49, %v726_v49 }
 0x5fb   : > { %v940_v51 = vsel %vm682_vm3, %v730_v50, 0 }
 0x5fc   : > { %1544 = vmatpush3.bf16.xpose.msra.mxu1 %v940_v51 }
 0x621   : > { %v771_v52 = vpop.trf.xlu1 }
 0x622   : > { %1540 = vmatmul.mubr.msk.bf16.vlgmr.msra.gmra.mrb[8].mxu0 %vm682_vm3, %v771_v52 }
 0x623   : > { %1557 = vmatprep.mubr.msk.bf16.mxu0 %vm1797_vm1, %v1796_v33  ;;  %1550 = vmatpush3.bf16.msra.mxu0 %v1639_v6 }
 0x624   : > { %1551 = vmatprep.subr.bf16.mxu0 %v1796_v33 }
 0x625   : > { %v787_v53 = vpop.trf.xlu1 }
 0x626   : > { %1546 = vmatmul.mubr.msk.bf16.vlgmr.msra.gmra.mrb[20].mxu1 %vm682_vm3, %v787_v53 }
 0x627   : > { %1552 = vmatpush3.bf16.msra.mxu0 %v1640_v7 }
 0x628   : > { %1553 = vmatprep.subr.bf16.mxu0 %v1796_v33 }
 0x62b   : > { %1554 = vmatpush3.bf16.msra.mxu0 %v1641_v29 }
 0x62c   : > { %1555 = vmatprep.subr.bf16.mxu0 %v1796_v33 }
 0x62f   : > { %1556 = vmatpush3.bf16.msra.mxu0 %v1642_v23 }
 0x698   : > { %v835_v54 = vpop.f32.mrb[4].mxu0 }
 0x699   : > { %983 = vxpose.xlu0.b32.start [1/2] (short) (narrow) %v835_v54, 8  ;;  %v1529_v55 = vpop.f32.mrb[5].mxu0 }
 0x69a   : > { %v838_v56 = vpop.f32.mrb[6].mxu0 }
 0x69b   : > { %v1530_v57 = vpop.f32.mrb[7].mxu0 }
 0x69d   : > { %984 = vxpose.xlu0.b32.end [2/2] (short) (narrow) %v838_v56, 8 }
 0x6c5   : > { %v882_v58 = vpop.f32.mrb[16].mxu1 }
 0x6c6   : > { %1015 = vxpose.xlu1.b32.start [1/2] (short) (narrow) %v882_v58, 8  ;;  %v1535_v59 = vpop.f32.mrb[17].mxu1 }
 0x6c7   : > { %v885_v60 = vpop.f32.mrb[18].mxu1 }
 0x6c8   : > { %v1536_v61 = vpop.f32.mrb[19].mxu1 }
 0x6ca   : > { %1016 = vxpose.xlu1.b32.end [2/2] (short) (narrow) %v885_v60, 8 }
 0x6f5   : > { %v929_v62 = vpop.f32.mrb[8].mxu0 }
 0x6f6   : > { %1047 = vxpose.xlu0.b32.start [1/2] (short) (narrow) %v929_v62, 8  ;;  %v1541_v63 = vpop.f32.mrb[9].mxu0 }
 0x6f7   : > { %v932_v0 = vpop.f32.mrb[10].mxu0 }
 0x6f8   : > { %v1542_v1 = vpop.f32.mrb[11].mxu0 }
 0x6f9   : > { %v976_v2 = vpop.f32.mrb[20].mxu1  ;;  %v1470_v1 = vld [vmem:[%s2128_s6] ss:$0 sm:$0xff] }
 0x6fa   : > { %1048 = vxpose.xlu0.b32.end [2/2] (short) (narrow) %v932_v0, 8  ;;  %v1547_v3 = vpop.f32.mrb[21].mxu1 }
 0x6fb   : > { %v979_v4 = vpop.f32.mrb[22].mxu1 }
 0x6fc   : > { %v1548_v5 = vpop.f32.mrb[23].mxu1 }
 0x6fe   : > { %1079 = vxpose.xlu0.b32.start [1/2] (short) (narrow) %v976_v2, 8 }
 0x702   : > { %1080 = vxpose.xlu0.b32.end [2/2] (short) (narrow) %v979_v4, 8 }
 0x719   : > { %v999_v8 = vpop.trf.xlu0 }
 0x746   : > { %v1031_v16 = vpop.trf.xlu1 }
 0x776   : > { %v1063_v14 = vpop.trf.xlu0 }
 0x777   : > { %v1111_v18 = vcombine.low %v999_v8, %v1063_v14  ;;  %v1112_v19 = vcombine.high %v999_v8, %v1063_v14 }
 0x779   : > { %v1119_v25 = vrot.slane %v1111_v18, %v1118_v17  ;;  %v1126_v26 = vrot.slane %v1112_v19, %v1118_v17 }
 0x77e   : > { %v1095_v20 = vpop.trf.xlu0 }
 0x77f   : > { %v1127_v21 = vcombine.low %v1031_v16, %v1095_v20  ;;  %v1128_v22 = vcombine.high %v1031_v16, %v1095_v20 }
 0x781   : > { %v1135_v27 = vrot.slane %v1127_v21, %v1118_v17  ;;  %v1142_v28 = vrot.slane %v1128_v22, %v1118_v17 }
 0x783   : > { %v1143_v30 = vcombine.low %v1119_v25, %v1135_v27  ;;  %v1144_v31 = vcombine.high %v1119_v25, %v1135_v27  ;;  %v1159_v32 = vcombine.low %v1126_v26, %v1142_v28  ;;  %v1160_v34 = vcombine.high %v1126_v26, %v1142_v28 }
 0x785   : > { %v1151_v35 = vrot.slane %v1143_v30, %v1150_v24  ;;  %v1158_v36 = vrot.slane %v1144_v31, %v1150_v24  ;;  %v1167_v37 = vrot.slane %v1159_v32, %v1150_v24  ;;  %v1174_v38 = vrot.slane %v1160_v34, %v1150_v24 }
 0x787   : > { %v1179_v39 = vcombine.low %v1151_v35, %v1158_v36  ;;  %v1468_v40 = vcombine.high %v1151_v35, %v1158_v36  ;;  %v1195_v41 = vcombine.low %v1167_v37, %v1174_v38  ;;  %v1469_v42 = vcombine.high %v1167_v37, %v1174_v38 }
 0x789   : > { %v1186_v43 = vrot.slane %v1179_v39, %v1118_v17  ;;  %v1194_v44 = vrot.slane %v1468_v40, %v1118_v17  ;;  %v1202_v45 = vrot.slane %v1195_v41, %v1118_v17  ;;  %v1210_v46 = vrot.slane %v1469_v42, %v1118_v17 }
 0x78b   : > { %v1212_v47 = vcombine.high %v1186_v43, %v1194_v44  ;;  %v1228_v48 = vcombine.high %v1202_v45, %v1210_v46  ;;  %v1211_v49 = vcombine.low %v1186_v43, %v1194_v44  ;;  %v1227_v50 = vcombine.low %v1202_v45, %v1210_v46 }
 0x78d   : > { %v1226_v51 = vrot.slane %v1212_v47, %v1150_v24  ;;  %v1242_v52 = vrot.slane %v1228_v48, %v1150_v24  ;;  %v1219_v33 = vrot.slane %v1211_v49, %v1150_v24  ;;  %v1235_v53 = vrot.slane %v1227_v50, %v1150_v24 }
 0x78f   : > { %v1245_v54 = vcombine.low %v1226_v51, %v1242_v52  ;;  %v1244_v55 = vcombine.high %v1219_v33, %v1235_v53  ;;  %v1243_v56 = vcombine.low %v1219_v33, %v1235_v53  ;;  %v1246_v57 = vcombine.high %v1226_v51, %v1242_v52 }
 0x791   : > { %1252 = vrot.lane.b32.xlu0 %v1245_v54, %s1800_s19  ;;  %1248 = vrot.lane.b32.xlu1 %v1244_v55, %s1801_s18  ;;  %s1803_s19 = smov [#allocation7]  }
 0x792   : > { %s1721_s18 = sshll.u32 %s1803_s19, 4  ;;  %s1722_s18 = int_to_ptr.vmem [resolvable:$false] %s1721_s18 }
 0x793   : > { %p1724_p4 = scmp.lt.s32.totalorder %s2081_s8, %s1722_s18 }
 0x795   : > { %1256 = vrot.lane.b32.xlu1 %v1246_v57, %s1802_s17  ;;  %s1723_s17 = scalar_lea.vmem %s1722_s18, 256 }
 0x796   : > { %p1725_p7 = scmp.lt.s32.totalorder %s1723_s17, %s1717_s16 }
 0x798   : > { %p1726_p8 = por %p1725_p7, %p1724_p4 }
 0x79a   : > { %p1727_p11 = pnand %p1726_p8, %p1720_p3 }
 0x803   : > { %v1249_v58 = vpop.permute.xlu1 %1248  ;;  %v1253_v59 = vpop.permute.xlu0 %1252 }
 0x804   : > { %v1259_v60 = vsel %vm509_vm2, %v1243_v56, %v1249_v58 }
 0x805   : > { %v1260_v62 = vsel %vm302_vm0, %v1259_v60, %v1253_v59 }
 0x807   : > { %v1257_v61 = vpop.permute.xlu1 %1256 }
 0x808   : > { %v1262_v63 = vsel %vm1261_vm4, %v1260_v62, %v1257_v61 }
 0x809   : > { %v1263_v0 = vpack.c.bf16 %v1262_v63, %v1262_v63 }
 0x80b   : > { %1558 = vmatmul.mubr.msk.bf16.vlgmr.msra.gmra.mrb[12].mxu0 %vm1303_vm5, %v1263_v0 }
 0x8de   : > { %v1341_v2 = vpop.f32.mrb[12].mxu0 }
 0x8df   : > { %v1342_v3 = vadd.f32 %v1470_v1, %v1341_v2  ;;  %v1559_v4 = vpop.f32.mrb[13].mxu0 }
 0x8e0   : > { %v1344_v5 = vpop.f32.mrb[14].mxu0 }
 0x8e1   : > { %v1560_v6 = vpop.f32.mrb[15].mxu0  ;;  %1347 = vst.msk [vmem:[%s295_s29] sm:$0xff] %vm302_vm0, %v1342_v3 }
 0x8e2   : > { %1730 = shalt.err (!%p1727_p11)
}
 0x8e3   : > { %s1731_s20 = scalar_lea.hbm %s2079_s14, 128  ;;  %s1735_s22 = scalar_lea.hbm %s2129_s7, 256 }
 0x8e4   : > { %p1732_p13 = scmp.ne.s32.totalorder %s2079_s14, %s1731_s20  ;;  %p1736_p5 = scmp.lt.u32.totalorder %s2079_s14, %s2129_s7 }
 0x8e5   : > { %p1737_p9 = scmp.lt.u32.totalorder %s1735_s22, %s1731_s20  ;;  %p1739_p12 = scmp.lt.u32.totalorder %s1731_s20, %s2079_s14 }
 0x8e6   : > { %p1733_p0 = pnand %p1732_p13, %p2142_p1 }
 0x8e7   : > { %p1738_p10 = por %p1737_p9, %p1736_p5 }
 0x8e8   : > { %p1734_p6 = pneg %p1733_p0 }
 0x8e9   : > { %p1740_p2 = por %p1739_p12, %p1738_p10 }
 0x8eb   : > { %p1741_p3 = pnand %p1740_p2, %p1734_p6 }
 0x8ed   : > { %1744 = shalt.err (!%p1741_p3)
}
 0x8ee   : > { %1569 = dma.vmem_to_hbm [thread:$0]  (%p2142_p1), %s2081_s8, 128, %s2079_s14, %s1349_s28  }
 0x8ef PF: > { %p1586_p4 = scmp.ge.s32.totalorder %s1787_s27, 2  ;;  %s1374_s9 = sand.u32 1, %s1775_s24  }
 0x8f0   : > { %p2143_p7 = scmp.ne.s32.totalorder %s2134_s12, 0  ;;  %s1375_s15 = scalar_lea.sflag [#allocation4], %s1374_s9 }
 0x8f2   : > { %p1579_p8 = pnand %p1586_p4, %p2143_p7 }
 0x8f4   : > { %1770 = dma.done.wait (!%p1579_p8), %s1375_s15, 128  }
 0x8f5   : > { %1772 = vsyncadd (!%p1579_p8), %s1375_s15, 4294967168  ;;  %p19_p11 = scmp.ge.s32.totalorder %s1869_s30, 4   ;;  %s2144_s24 = smov %s1779_s25 }
 0x8f6   : > { %s2145_s25 = smov %s1783_s26  ;;  %s2146_s26 = smov %s1880_s10 }
 0x8f7   : > { %s2147_s27 = smov %s1869_s30  ;;  %21 = sbr.rel (!%p19_p11) target bundleno = 5 (0x5), region = 92 }
 0x8fe   :  { %1380 = vsyncpa [#allocation3], 1 }
 0x8ff   :  { %1382 = vsyncpa [#allocation3 + $0x1], 1 }
 0x900   :  { %1383 = vsyncpa [#allocation6], 1 }
 0x901   :  { %1384 = vsyncpa [#allocation4], 1 }
 0x902   :  { %1386 = vsyncpa [#allocation4 + $0x1], 1 }

// kernel: tpu_custom_call.1
= control target key start
LH: loop header
LB: loop body
LE: loop exit
PB: predicated region body
PF: predicated region fallthrough
CT: control target
= control target key end

     0   :  { %12 = vsyncpa [#allocation3], 0  ;;  %s2122_s0 = inlined_call_operand.vmem [shape: f32[2,8,32], index: 0, kind: input, shape index: {}]   ;;  %s2123_s1 = inlined_call_operand.hbm [shape: f32[1,32], index: 1, kind: input, shape index: {}]   ;;  %s2124_s2 = inlined_call_operand.hbm [shape: f32[1,32], index: 2, kind: input, shape index: {}]   ;;  %s2125_s3 = inlined_call_operand.vmem [shape: bf16[32,192], index: 3, kind: input, shape index: {}]   ;;  %s2126_s4 = inlined_call_operand.vmem [shape: f32[1,192], index: 4, kind: input, shape index: {}]   ;;  %s2127_s5 = inlined_call_operand.vmem [shape: bf16[64,32], index: 5, kind: input, shape index: {}]   ;;  %s2128_s6 = inlined_call_operand.vmem [shape: f32[1,32], index: 6, kind: input, shape index: {}]   ;;  %s2129_s7 = inlined_call_operand.hbm [shape: f32[2,8,32], index: 7, kind: output, shape index: {}]  }
   0x1   :  { %13 = vsyncpa [#allocation6], 0 }
   0x2   :  { %14 = vsyncpa [#allocation4], 0 }
   0x3   :  { %16 = vsyncpa [#allocation4 + $0x1], 0  ;;  %s1844_s24 = smov 0   ;;  %s1846_s25 = smov 0  }
   0x4   :  { %s1848_s26 = smov 0   ;;  %s1850_s27 = smov 0  }
   0x5 LB: > { %s1865_s28 = sadd.s32 4294967295, %s1787_s27   ;;  %s1443_s29 = sadd.s32 4294967294, %s1787_s27   ;;  %s1787_s27 = sphi %s1850_s27, %s2147_s27   ;;  %s1783_s26 = sphi %s1848_s26, %s2146_s26   ;;  %s1779_s25 = sphi %s1846_s25, %s2145_s25   ;;  %s1775_s24 = sphi %s1844_s24, %s2144_s24  }
   0x6   : > { %s1869_s30 = sadd.s32 1, %s1787_s27   ;;  %s181_s8 = sadd.s32 1, %s1783_s26 }
   0x7   : > { %s178_s9 = ssub.s32 %s1787_s27, %s1869_s30  ;;  %p191_p0 = scmp.ne.s32.totalorder %s1783_s26, %s1779_s25 }
   0x8   : > { %p179_p1 = scmp.eq.s32.totalorder %s178_s9, 0  ;;  %p192_p2 = scmp.eq.s32.totalorder %s1865_s28, 1 }
   0x9   : > { %p197_p3 = scmp.ne.s32.totalorder %s1779_s25, %s1775_s24  ;;  %p198_p4 = scmp.eq.s32.totalorder %s1443_s29, 1 }
   0xa   : > { %s1880_s10 = scalar_select %p179_p1, %s1783_s26, %s181_s8  }
   0xb   : > { %p1882_p5 = por %p192_p2, %p191_p0  ;;  %p1886_p6 = por %p198_p4, %p197_p3 }
   0xc   : > { %p1444_p7 = scmp.ge.s32.totalorder %s1787_s27, 1  ;;  %p205_p8 = scmp.lt.s32.totalorder %s1787_s27, 3 }
   0xd   : > { %s2133_s11 = scalar_select %p1882_p5, 1, 0 }
   0xe   : > { %s2134_s12 = scalar_select %p1886_p6, 1, 0 }
   0xf   : > { %p2130_p9 = scmp.eq.s32.totalorder %s1865_s28, 0  ;;  %p1893_p10 = pnand %p1444_p7, %p205_p8 }
  0x10   : > { %s1789_s14 = smov [#allocation2]   ;;  %s1790_s16 = smov [#allocation5]  }
  0x11   : > { %s2135_s13 = scalar_select %p1893_p10, 1, 0 }
  0x12   : > { %s218_s15 = sshll.u32 %s1789_s14, 4  ;;  %p1571_p11 = pneg %p1893_p10  ;;  %s219_s15 = int_to_ptr.vmem [resolvable:$true] %s218_s15 }
  0x13   : > { %s229_s17 = sshll.u32 %s1790_s16, 4  ;;  %s1661_s21 = scalar_lea.hbm %s2123_s1, 16  ;;  %s1905_s17 = int_to_ptr.vmem [resolvable:$true] %s229_s17 }
  0x14   : > { %p1901_p12 = pnand %p2130_p9, %p1571_p11  ;;  %p1662_p13 = scmp.ne.s32.totalorder %s2123_s1, %s1661_s21 }
  0x15   : > { %p1668_p3 = scmp.lt.u32.totalorder %s1661_s21, %s2123_s1 }
  0x16   : > { %p1663_p0 = pneg %p1901_p12 }
  0x18   : > { %p1664_p1 = pnand %p1663_p0, %p1662_p13 }
  0x1a   : > { %p1665_p2 = pneg %p1664_p1 }
  0x1c   : > { %p1670_p4 = pnand %p1668_p3, %p1665_p2 }
  0x1e   : > { %1673 = shalt.err (!%p1670_p4)
}
  0x1f   : > { %s1674_s9 = scalar_lea.vmem %s219_s15, 16  ;;  %s1681_s14 = scalar_lea.vmem %s219_s15, 32 }
  0x20   : > { %p1675_p7 = scmp.ne.s32.totalorder %s219_s15, %s1674_s9  ;;  %p1682_p9 = scmp.lt.s32.totalorder %s219_s15, %s219_s15 }
  0x21   : > { %p1683_p6 = scmp.lt.s32.totalorder %s1681_s14, %s1674_s9 }
  0x22   : > { %p1677_p8 = pnand %p1675_p7, %p1663_p0 }
  0x23   : > { %p1684_p5 = por %p1683_p6, %p1682_p9 }
  0x24   : > { %p1678_p11 = pneg %p1677_p8 }
  0x26   : > { %p1685_p10 = pnand %p1684_p5, %p1678_p11 }
  0x28   : > { %1688 = shalt.err (!%p1685_p10)
}
  0x29   : > { %1574 = dma.hbm_to_vmem [thread:$0]  (!%p1901_p12), %s2123_s1, 16, %s219_s15, [#allocation3]  }
  0x2a   : > { %s1689_s22 = scalar_lea.hbm %s2124_s2, 16 }
  0x2b   : > { %p1690_p13 = scmp.ne.s32.totalorder %s2124_s2, %s1689_s22  ;;  %p1696_p9 = scmp.lt.u32.totalorder %s1689_s22, %s2124_s2 }
  0x2d   : > { %p1692_p6 = pnand %p1690_p13, %p1663_p0 }
  0x2f   : > { %p1693_p5 = pneg %p1692_p6 }
  0x31   : > { %p1698_p10 = pnand %p1696_p9, %p1693_p5 }
  0x33   : > { %1701 = shalt.err (!%p1698_p10)
}
  0x34   : > { %s1702_s15 = scalar_lea.vmem %s1905_s17, 16  ;;  %s1709_s14 = scalar_lea.vmem %s1905_s17, 32 }
  0x35   : > { %p1703_p1 = scmp.ne.s32.totalorder %s1905_s17, %s1702_s15  ;;  %p1710_p4 = scmp.lt.s32.totalorder %s1905_s17, %s1905_s17 }
  0x36   : > { %p1711_p7 = scmp.lt.s32.totalorder %s1709_s14, %s1702_s15 }
  0x37   : > { %p1705_p2 = pnand %p1703_p1, %p1663_p0 }
  0x38   : > { %p1712_p8 = por %p1711_p7, %p1710_p4 }
  0x39   : > { %p1706_p3 = pneg %p1705_p2 }
  0x3b   : > { %p1713_p11 = pnand %p1712_p8, %p1706_p3 }
  0x3d   : > { %1716 = shalt.err (!%p1713_p11)
}
  0x3e   : > { %1577 = dma.hbm_to_vmem [thread:$0]  (!%p1901_p12), %s2124_s2, 16, %s1905_s17, [#allocation6]  }
  0x3f   : > { %p2137_p13 = scmp.ne.s32.totalorder %s2135_s13, 0 }
  0x40   : > { %p2138_p0 = scmp.eq.s32.totalorder (!%p2137_p13), %s1865_s28, 0 }
  0x41   : > { %261 = sbr.rel (%p2137_p13) target bundleno = 2287 (0x8ef), region = 48 }
  0x48   : > { %1762 = dma.done.wait (%p2138_p0), [#allocation3], 16   ;;  %p2139_p6 = pmov %p2138_p0 }
  0x49   : > { %p2140_p5 = pmov %p2138_p0 }
  0x4a   : > { %1764 = vsyncadd (%p2139_p6), [#allocation3], 4294967280 }
  0x4b   : > { %1766 = dma.done.wait (%p2140_p5), [#allocation6], 16   ;;  %p2141_p9 = pmov %p2138_p0 }
  0x4c   : > { %p296_p10 = scmp.lt.s32.totalorder %s1865_s28, 1  ;;  %vm302_vm0 = vcmask 261120   ;;  %v1633_v7 = vld [vmem:[%s2125_s3 + $0x4] ss:$8 sps:$4 sm:$0xff]   ;;  %v1635_v8 = vld [vmem:[%s2125_s3] ss:$8 sps:$4 sm:$0xff]   ;;  %v340_v22 = vlaneseq }
  0x4d   : > { %1768 = vsyncadd (%p2141_p9), [#allocation6], 4294967280  ;;  %v1636_v9 = vld [vmem:[%s2125_s3 + $0x14] ss:$8 sps:$4 sm:$0xff]   ;;  %373 = vmatprep.subr.bf16.mxu0 %v1633_v7  ;;  %v1791_v10 = vmov 0   ;;  %s1793_s20 = smov 112  }
  0x4e   : > { %s297_s18 = scalar_select %p296_p10, %s1865_s28, 1  ;;  %405 = vmatprep.mubr.bf16.mxu0 %v1791_v10  ;;  %374 = vmatpush1.bf16.msra.mxu0 %v1635_v8  ;;  %v1638_v11 = vld [vmem:[%s2125_s3 + $0x10] ss:$8 sps:$4 sm:$0xff]   ;;  %v1453_v16 = vld [vmem:[#allocation2] ss:$0 sm:$0xff]  ;;  %v1985_v23 = vshrl.u32 %v340_v22, 7 }
  0x4f   : > { %375 = vmatprep.subr.bf16.mxu0 %v1636_v9  ;;  %v1454_v18 = vld [vmem:[#allocation5] ss:$0 sm:$0xff]  ;;  %v1991_v25 = vld [vmem:[%s2126_s4] sm:$0x3]  ;;  %s1794_s13 = smov 96   ;;  %v1796_v33 = vmov 0.0  }
  0x50   : > { %s1452_s17 = sshll.u32 %s297_s18, 3  ;;  %v342_v24 = vsub.s32 0, %v1985_v23  ;;  %1501 = vmatprep.subr.bf16.mxu1 %v1796_v33  ;;  %vm1797_vm1 = vmmov 0   ;;  %vm509_vm2 = vcmask 130048   ;;  %vm682_vm3 = vcmask 64512   ;;  %s1800_s19 = smov 32  }
  0x51   : > { %s299_s21 = scalar_lea.vmem %s2122_s0, %s1452_s17  ;;  %s1792_s17 = smov 80   ;;  %1503 = vmatprep.mubr.msk.bf16.mxu1 %vm1797_vm1, %v1796_v33  ;;  %v346_v60 = vsub.s32 1, %v1985_v23  ;;  %vm1261_vm4 = vcmask 392192   ;;  %vm1303_vm5 = vcmask 523264  }
  0x52   : > { %v301_v0 = vld [vmem:[%s299_s21] sm:$0xff]  ;;  %376 = vmatpush1.bf16.msra.mxu0 %v1638_v11  ;;  %v343_v26 = vrot.slane %v1991_v25, %v342_v24  ;;  %s1795_s21 = smov 64   ;;  %s1801_s18 = smov 16  }
  0x53   : > { %v303_v1 = vsel %vm302_vm0, %v301_v0, 0.0  ;;  %1525 = vmatprep.subr.bf16.mxu0 %v1796_v33  ;;  %v347_v62 = vrot.slane %v1991_v25, %v346_v60  ;;  %s1477_s23 = sshll.u32 %s1865_s28, 7  ;;  %p2142_p1 = scmp.ne.s32.totalorder %s2133_s11, 0 }
  0x54   : > { %304 = vadd.xlane.f32.xlu0 %v303_v1  ;;  %s2079_s14 = scalar_lea.hbm %s2129_s7, %s1477_s23 }
  0xe1   : > { %v305_v2 = vpop.xlane.xlu0 %304 }
  0xe2   : > { %v307_v3 = vmul.f32 0.03125, %v305_v2 }
  0xe4   : > { %v308_v4 = vsub.f32 %v301_v0, %v307_v3 }
  0xe6   : > { %v309_v5 = vmul.f32 %v308_v4, %v308_v4 }
  0xe8   : > { %v310_v6 = vsel %vm302_vm0, %v309_v5, 0.0 }
  0xe9   : > { %311 = vadd.xlane.f32.xlu0 %v310_v6 }
 0x176   : > { %v312_v12 = vpop.xlane.xlu0 %311 }
 0x177   : > { %v313_v13 = vmul.f32 0.03125, %v312_v12 }
 0x179   : > { %v314_v14 = vadd.f32 1e-05, %v313_v13 }
 0x17b   : > { %1643 = vrsqrt.f32 %v314_v14 }
 0x185   : > { %v1644_v15 = vpop.eup %1643 }
 0x186   : > { %v316_v17 = vmul.f32 %v1644_v15, %v308_v4 }
 0x188   : > { %v324_v19 = vmul.f32 %v1453_v16, %v316_v17 }
 0x18a   : > { %v332_v20 = vadd.f32 %v1454_v18, %v324_v19 }
 0x18c   : > { %v333_v21 = vpack.c.bf16 %v332_v20, %v332_v20 }
 0x18e   : > { %1459 = vmatmul.mubr.msk.bf16.vlgmr.msra.gmra.mrb[0].mxu0 %vm302_vm0, %v333_v21 }
 0x18f   : > { %1527 = vmatprep.mubr.msk.bf16.mxu0 %vm1797_vm1, %v1796_v33 }
 0x261   : > { %v407_v27 = vpop.f32.mrb[0].mxu0 }
 0x262   : > { %v408_v28 = vadd.f32 %v407_v27, %v343_v26  ;;  %v1994_v29 = vpop.f32.mrb[1].mxu0 }
 0x263   : > { %v411_v30 = vpop.f32.mrb[2].mxu0  ;;  %v410_v3 = vadd.f32 %v1994_v29, %v347_v62 }
 0x264   : > { %v414_v31 = vpack.c.bf16 %v408_v28, %v408_v28  ;;  %v412_v32 = vpop.f32.mrb[3].mxu0 }
 0x265   : > { %v422_v4 = vpack.c.bf16 %v410_v3, %v410_v3 }
 0x266   : > { %420 = vrot.lane.b32.xlu0 %v414_v31, %s1792_s17  ;;  %416 = vrot.lane.b32.xlu1 %v414_v31, %s1793_s20 }
 0x26a   : > { %418 = vrot.lane.b32.xlu1 %v414_v31, %s1794_s13 }
 0x26e   : > { %433 = vrot.lane.b32.xlu1 %v414_v31, %s1795_s21 }
 0x2d8   : > { %v417_v34 = vpop.permute.xlu1 %416  ;;  %v421_v36 = vpop.permute.xlu0 %420 }
 0x2d9   : > { %435 = vrot.lane.b32.xlu1 %v417_v34, %s1795_s21 }
 0x2dc   : > { %v419_v35 = vpop.permute.xlu1 %418 }
 0x2dd   : > { %437 = vrot.lane.b32.xlu1 %v419_v35, %s1795_s21 }
 0x2e0   : > { %v434_v37 = vpop.permute.xlu1 %433 }
 0x2e1   : > { %439 = vrot.lane.b32.xlu1 %v421_v36, %s1795_s21 }
 0x304   : > { %445 = vxpose.xlu1.c.b16.start.end [1/1] (short) (narrow) %v434_v37, 16 }
 0x34b   : > { %v436_v38 = vpop.permute.xlu1 %435 }
 0x34c   : > { %461 = vxpose.xlu0.c.b16.start.end [1/1] (short) (narrow) %v436_v38, 16 }
 0x34f   : > { %v438_v39 = vpop.permute.xlu1 %437 }
 0x350   : > { %477 = vxpose.xlu1.c.b16.start.end [1/1] (short) (narrow) %v438_v39, 16 }
 0x353   : > { %v440_v40 = vpop.permute.xlu1 %439 }
 0x354   : > { %493 = vxpose.xlu0.c.b16.start.end [1/1] (short) (narrow) %v440_v40, 16 }
 0x36a   : > { %v453_v41 = vpop.trf.xlu1 }
 0x36b   : > { %1502 = vmatpush3.bf16.msra.mxu1 %v453_v41 }
 0x36c   : > { %1507 = vmatprep.subr.bf16.mxu1 %v1796_v33 }
 0x36e   : > { %1504 = vmatmul.mubr.msk.bf16.vlgmr.msra.gmra.mrb[0].mxu1 %vm509_vm2, %v414_v31 }
 0x36f   : > { %1509 = vmatprep.mubr.msk.bf16.mxu1 %vm1797_vm1, %v1796_v33 }
 0x3b2   : > { %v469_v42 = vpop.trf.xlu0 }
 0x3b3   : > { %1508 = vmatpush3.bf16.msra.mxu1 %v469_v42 }
 0x3b4   : > { %1513 = vmatprep.subr.bf16.mxu1 %v1796_v33 }
 0x3b6   : > { %1510 = vmatmul.mubr.msk.bf16.vlgmr.msra.gmra.mrb[4].mxu1 %vm509_vm2, %v417_v34  ;;  %v485_v43 = vpop.trf.xlu1 }
 0x3b7   : > { %1514 = vmatpush3.bf16.msra.mxu1 %v485_v43  ;;  %1515 = vmatprep.mubr.msk.bf16.mxu1 %vm1797_vm1, %v1796_v33 }
 0x3b8   : > { %1519 = vmatprep.subr.bf16.mxu1 %v1796_v33 }
 0x3ba   : > { %v501_v44 = vpop.trf.xlu0 }
 0x3be   : > { %1516 = vmatmul.mubr.msk.bf16.vlgmr.msra.gmra.mrb[8].mxu1 %vm509_vm2, %v419_v35 }
 0x3bf   : > { %1520 = vmatpush3.bf16.msra.mxu1 %v501_v44  ;;  %1521 = vmatprep.mubr.msk.bf16.mxu1 %vm1797_vm1, %v1796_v33 }
 0x3c0   : > { %1531 = vmatprep.subr.bf16.mxu1 %v1796_v33 }
 0x3c6   : > { %1522 = vmatmul.mubr.msk.bf16.vlgmr.msra.gmra.mrb[12].mxu1 %vm509_vm2, %v421_v36 }
 0x3c7   : > { %1533 = vmatprep.mubr.msk.bf16.mxu1 %vm1797_vm1, %v1796_v33 }
 0x441   : > { %v547_v45 = vpop.f32.mrb[0].mxu1 }
 0x442   : > { %v1505_v46 = vpop.f32.mrb[1].mxu1  ;;  %v683_v47 = vsel %vm682_vm3, %v547_v45, -inf }
 0x443   : > { %684 = vmax.xlane.f32.xlu1 %v683_v47  ;;  %v550_v48 = vpop.f32.mrb[2].mxu1 }
 0x444   : > { %v1506_v49 = vpop.f32.mrb[3].mxu1 }
 0x489   : > { %v590_v50 = vpop.f32.mrb[4].mxu1 }
 0x48a   : > { %v1511_v51 = vpop.f32.mrb[5].mxu1  ;;  %v686_v52 = vsel %vm682_vm3, %v590_v50, -inf }
 0x48b   : > { %687 = vmax.xlane.f32.xlu0 %v686_v52  ;;  %v593_v53 = vpop.f32.mrb[6].mxu1 }
 0x48c   : > { %v1512_v54 = vpop.f32.mrb[7].mxu1 }
 0x491   : > { %v633_v55 = vpop.f32.mrb[8].mxu1 }
 0x492   : > { %v1517_v56 = vpop.f32.mrb[9].mxu1  ;;  %v689_v57 = vsel %vm682_vm3, %v633_v55, -inf }
 0x493   : > { %690 = vmax.xlane.f32.xlu1 %v689_v57  ;;  %v636_v58 = vpop.f32.mrb[10].mxu1 }
 0x494   : > { %v1518_v59 = vpop.f32.mrb[11].mxu1 }
 0x499   : > { %v676_v61 = vpop.f32.mrb[12].mxu1 }
 0x49a   : > { %v1523_v63 = vpop.f32.mrb[13].mxu1  ;;  %v692_v0 = vsel %vm682_vm3, %v676_v61, -inf }
 0x49b   : > { %693 = vmax.xlane.f32.xlu0 %v692_v0  ;;  %v679_v1 = vpop.f32.mrb[14].mxu1 }
 0x49c   : > { %v1524_v2 = vpop.f32.mrb[15].mxu1 }
 0x4a4   : > { %424 = vrot.lane.b32.xlu1 %v422_v4, %s1793_s20  ;;  %s293_s20 = sand.u32 1, %s1779_s25  }
 0x4a5   : > { %s1349_s28 = scalar_lea.sflag [#allocation4], %s293_s20 }
 0x4a8   : > { %430 = vrot.lane.b32.xlu1 %v422_v4, %s1792_s17  ;;  %s1802_s17 = smov 48  }
 0x4d0   : > { %v685_v5 = vpop.xlane.xlu1 %684 }
 0x4d1   : > { %v695_v6 = vsub.f32 %v547_v45, %v685_v5 }
 0x4d3   : > { %v699_v7 = vmul.f32 1.442695, %v695_v6  ;;  %v1639_v6 = vld [vmem:[%s2127_s5] sm:$0xff]  }
 0x4d5   : > { %1645 = vpow2.f32 %v699_v7  ;;  %v1640_v7 = vld [vmem:[%s2127_s5 + $0x8] sm:$0xff]  }
 0x4df   : > { %v1646_v8 = vpop.eup %1645 }
 0x4e0   : > { %v707_v9 = vsel %vm682_vm3, %v1646_v8, 0.0 }
 0x4e1   : > { %708 = vadd.xlane.f32.xlu0 %v707_v9  ;;  %v1798_v9 = vmov 1983009808  }
 0x518   : > { %v688_v10 = vpop.xlane.xlu0 %687 }
 0x519   : > { %v696_v11 = vsub.f32 %v590_v50, %v688_v10  ;;  %v1114_v10 = vunpack.c.l.s4 %v1798_v9 }
 0x51b   : > { %v701_v12 = vmul.f32 1.442695, %v696_v11  ;;  %v1799_v11 = vmov 1934713408  }
 0x51d   : > { %1647 = vpow2.f32 %v701_v12  ;;  %v1146_v12 = vunpack.c.l.s4 %v1799_v11 }
 0x520   : > { %v691_v13 = vpop.xlane.xlu1 %690 }
 0x521   : > { %v697_v14 = vsub.f32 %v633_v55, %v691_v13  ;;  %v1115_v13 = vunpack.c.0.s8 %v1114_v10 }
 0x523   : > { %v703_v15 = vmul.f32 1.442695, %v697_v14 }
 0x524   : > { %v425_v31 = vpop.permute.xlu1 %424 }
 0x525   : > { %1649 = vpow2.f32 %v703_v15  ;;  %v1147_v15 = vunpack.c.0.s8 %v1146_v12 }
 0x527   : > { %v1648_v16 = vpop.eup %1647 }
 0x528   : > { %v710_v17 = vsel %vm682_vm3, %v1648_v16, 0.0  ;;  %v694_v20 = vpop.xlane.xlu0 %693  ;;  %v431_v34 = vpop.permute.xlu1 %430 }
 0x529   : > { %711 = vadd.xlane.f32.xlu0 %v710_v17  ;;  %v698_v21 = vsub.f32 %v676_v61, %v694_v20  ;;  %v1118_v17 = vsub.s32 %v1115_v13, %v1985_v23 }
 0x52b   : > { %v705_v22 = vmul.f32 1.442695, %v698_v21 }
 0x52d   : > { %1651 = vpow2.f32 %v705_v22 }
 0x52f   : > { %v1650_v18 = vpop.eup %1649 }
 0x530   : > { %v713_v19 = vsel %vm682_vm3, %v1650_v18, 0.0 }
 0x531   : > { %714 = vadd.xlane.f32.xlu1 %v713_v19 }
 0x537   : > { %v1652_v24 = vpop.eup %1651 }
 0x538   : > { %v716_v25 = vsel %vm682_vm3, %v1652_v24, 0.0 }
 0x53f   : > { %427 = vrot.lane.b32.xlu0 %v422_v4, %s1794_s13  ;;  %s1451_s13 = sshll.u32 %s293_s20, 3 }
 0x540   : > { %s295_s29 = scalar_lea.vmem [#allocation7], %s1451_s13 }
 0x541   : > { %s1362_s8 = sshll.u32 %s295_s29, 4  ;;  %s2081_s8 = int_to_ptr.vmem [resolvable:$true] %s1362_s8 }
 0x542   : > { %s1717_s16 = scalar_lea.vmem %s2081_s8, 128 }
 0x543   : > { %p1718_p12 = scmp.ne.s32.totalorder %s2081_s8, %s1717_s16 }
 0x545   : > { %p1719_p2 = pnand %p1718_p12, %p2142_p1 }
 0x547   : > { %p1720_p3 = pneg %p1719_p2 }
 0x55e   : > { %717 = vadd.xlane.f32.xlu0 %v716_v25  ;;  %731 = vxpose.xlu1.c.b16.start.end [1/1] (short) (narrow) %v422_v4, 16 }
 0x56e   : > { %v709_v26 = vpop.xlane.xlu0 %708 }
 0x56f   : > { %1653 = vrcp.f32 %v709_v26 }
 0x579   : > { %v1654_v27 = vpop.eup %1653 }
 0x57a   : > { %v723_v28 = vmul.f32 %v1654_v27, %v1646_v8 }
 0x57c   : > { %v727_v29 = vpack.c.bf16 %v723_v28, %v723_v28 }
 0x57e   : > { %v799_v30 = vsel %vm682_vm3, %v727_v29, 0  ;;  %v1641_v29 = vld [vmem:[%s2127_s5 + $0x10] sm:$0xff]  }
 0x57f   : > { %1526 = vmatpush3.bf16.xpose.msra.mxu0 %v799_v30 }
 0x580   : > { %1537 = vmatprep.subr.bf16.mxu0 %v1796_v33 }
 0x58b   : > { %747 = vxpose.xlu0.c.b16.start.end [1/1] (short) (narrow) %v425_v31, 16 }
 0x5b6   : > { %v712_v32 = vpop.xlane.xlu0 %711 }
 0x5b7   : > { %1655 = vrcp.f32 %v712_v32 }
 0x5ba   : > { %v428_v35 = vpop.permute.xlu0 %427 }
 0x5bb   : > { %763 = vxpose.xlu1.c.b16.start.end [1/1] (short) (narrow) %v428_v35, 16 }
 0x5be   : > { %v715_v36 = vpop.xlane.xlu1 %714 }
 0x5bf   : > { %1657 = vrcp.f32 %v715_v36  ;;  %779 = vxpose.xlu1.c.b16.start.end [1/1] (short) (narrow) %v431_v34, 16 }
 0x5c1   : > { %v1656_v37 = vpop.eup %1655 }
 0x5c2   : > { %v724_v38 = vmul.f32 %v1656_v37, %v1648_v16 }
 0x5c4   : > { %v728_v39 = vpack.c.bf16 %v724_v38, %v724_v38  ;;  %v739_v40 = vpop.trf.xlu1 }
 0x5c5   : > { %1528 = vmatmul.mubr.msk.bf16.vlgmr.msra.gmra.mrb[4].mxu0 %vm682_vm3, %v739_v40 }
 0x5c6   : > { %v846_v41 = vsel %vm682_vm3, %v728_v39, 0  ;;  %1539 = vmatprep.mubr.msk.bf16.mxu0 %vm1797_vm1, %v1796_v33 }
 0x5c7   : > { %1532 = vmatpush3.bf16.xpose.msra.mxu1 %v846_v41 }
 0x5c8   : > { %1543 = vmatprep.subr.bf16.mxu1 %v1796_v33 }
 0x5c9   : > { %v1658_v42 = vpop.eup %1657 }
 0x5ca   : > { %v725_v43 = vmul.f32 %v1658_v42, %v1650_v18 }
 0x5cc   : > { %v729_v44 = vpack.c.bf16 %v725_v43, %v725_v43 }
 0x5ce   : > { %v893_v45 = vsel %vm682_vm3, %v729_v44, 0 }
 0x5cf   : > { %1538 = vmatpush3.bf16.xpose.msra.mxu0 %v893_v45 }
 0x5d0   : > { %1549 = vmatprep.subr.bf16.mxu0 %v1796_v33 }
 0x5eb   : > { %v718_v46 = vpop.xlane.xlu0 %717 }
 0x5ec   : > { %1659 = vrcp.f32 %v718_v46 }
 0x5f1   : > { %v755_v47 = vpop.trf.xlu0 }
 0x5f2   : > { %1534 = vmatmul.mubr.msk.bf16.vlgmr.msra.gmra.mrb[16].mxu1 %vm682_vm3, %v755_v47 }
 0x5f3   : > { %1545 = vmatprep.mubr.msk.bf16.mxu1 %vm1797_vm1, %v1796_v33 }
 0x5f6   : > { %v1660_v48 = vpop.eup %1659 }
 0x5f7   : > { %v726_v49 = vmul.f32 %v1660_v48, %v1652_v24  ;;  %v1150_v24 = vsub.s32 %v1147_v15, %v1985_v23  ;;  %v1642_v23 = vld [vmem:[%s2127_s5 + $0x18] sm:$0xff]  }
 0x5f9   : > { %v730_v50 = vpack.c.bf16 %v726_v49, %v726_v49 }
 0x5fb   : > { %v940_v51 = vsel %vm682_vm3, %v730_v50, 0 }
 0x5fc   : > { %1544 = vmatpush3.bf16.xpose.msra.mxu1 %v940_v51 }
 0x621   : > { %v771_v52 = vpop.trf.xlu1 }
 0x622   : > { %1540 = vmatmul.mubr.msk.bf16.vlgmr.msra.gmra.mrb[8].mxu0 %vm682_vm3, %v771_v52 }
 0x623   : > { %1557 = vmatprep.mubr.msk.bf16.mxu0 %vm1797_vm1, %v1796_v33  ;;  %1550 = vmatpush3.bf16.msra.mxu0 %v1639_v6 }
 0x624   : > { %1551 = vmatprep.subr.bf16.mxu0 %v1796_v33 }
 0x625   : > { %v787_v53 = vpop.trf.xlu1 }
 0x626   : > { %1546 = vmatmul.mubr.msk.bf16.vlgmr.msra.gmra.mrb[20].mxu1 %vm682_vm3, %v787_v53 }
 0x627   : > { %1552 = vmatpush3.bf16.msra.mxu0 %v1640_v7 }
 0x628   : > { %1553 = vmatprep.subr.bf16.mxu0 %v1796_v33 }
 0x62b   : > { %1554 = vmatpush3.bf16.msra.mxu0 %v1641_v29 }
 0x62c   : > { %1555 = vmatprep.subr.bf16.mxu0 %v1796_v33 }
 0x62f   : > { %1556 = vmatpush3.bf16.msra.mxu0 %v1642_v23 }
 0x698   : > { %v835_v54 = vpop.f32.mrb[4].mxu0 }
 0x699   : > { %983 = vxpose.xlu0.b32.start [1/2] (short) (narrow) %v835_v54, 8  ;;  %v1529_v55 = vpop.f32.mrb[5].mxu0 }
 0x69a   : > { %v838_v56 = vpop.f32.mrb[6].mxu0 }
 0x69b   : > { %v1530_v57 = vpop.f32.mrb[7].mxu0 }
 0x69d   : > { %984 = vxpose.xlu0.b32.end [2/2] (short) (narrow) %v838_v56, 8 }
 0x6c5   : > { %v882_v58 = vpop.f32.mrb[16].mxu1 }
 0x6c6   : > { %1015 = vxpose.xlu1.b32.start [1/2] (short) (narrow) %v882_v58, 8  ;;  %v1535_v59 = vpop.f32.mrb[17].mxu1 }
 0x6c7   : > { %v885_v60 = vpop.f32.mrb[18].mxu1 }
 0x6c8   : > { %v1536_v61 = vpop.f32.mrb[19].mxu1 }
 0x6ca   : > { %1016 = vxpose.xlu1.b32.end [2/2] (short) (narrow) %v885_v60, 8 }
 0x6f5   : > { %v929_v62 = vpop.f32.mrb[8].mxu0 }
 0x6f6   : > { %1047 = vxpose.xlu0.b32.start [1/2] (short) (narrow) %v929_v62, 8  ;;  %v1541_v63 = vpop.f32.mrb[9].mxu0 }
 0x6f7   : > { %v932_v0 = vpop.f32.mrb[10].mxu0 }
 0x6f8   : > { %v1542_v1 = vpop.f32.mrb[11].mxu0 }
 0x6f9   : > { %v976_v2 = vpop.f32.mrb[20].mxu1  ;;  %v1470_v1 = vld [vmem:[%s2128_s6] ss:$0 sm:$0xff] }
 0x6fa   : > { %1048 = vxpose.xlu0.b32.end [2/2] (short) (narrow) %v932_v0, 8  ;;  %v1547_v3 = vpop.f32.mrb[21].mxu1 }
 0x6fb   : > { %v979_v4 = vpop.f32.mrb[22].mxu1 }
 0x6fc   : > { %v1548_v5 = vpop.f32.mrb[23].mxu1 }
 0x6fe   : > { %1079 = vxpose.xlu0.b32.start [1/2] (short) (narrow) %v976_v2, 8 }
 0x702   : > { %1080 = vxpose.xlu0.b32.end [2/2] (short) (narrow) %v979_v4, 8 }
 0x719   : > { %v999_v8 = vpop.trf.xlu0 }
 0x746   : > { %v1031_v16 = vpop.trf.xlu1 }
 0x776   : > { %v1063_v14 = vpop.trf.xlu0 }
 0x777   : > { %v1111_v18 = vcombine.low %v999_v8, %v1063_v14  ;;  %v1112_v19 = vcombine.high %v999_v8, %v1063_v14 }
 0x779   : > { %v1119_v25 = vrot.slane %v1111_v18, %v1118_v17  ;;  %v1126_v26 = vrot.slane %v1112_v19, %v1118_v17 }
 0x77e   : > { %v1095_v20 = vpop.trf.xlu0 }
 0x77f   : > { %v1127_v21 = vcombine.low %v1031_v16, %v1095_v20  ;;  %v1128_v22 = vcombine.high %v1031_v16, %v1095_v20 }
 0x781   : > { %v1135_v27 = vrot.slane %v1127_v21, %v1118_v17  ;;  %v1142_v28 = vrot.slane %v1128_v22, %v1118_v17 }
 0x783   : > { %v1143_v30 = vcombine.low %v1119_v25, %v1135_v27  ;;  %v1144_v31 = vcombine.high %v1119_v25, %v1135_v27  ;;  %v1159_v32 = vcombine.low %v1126_v26, %v1142_v28  ;;  %v1160_v34 = vcombine.high %v1126_v26, %v1142_v28 }
 0x785   : > { %v1151_v35 = vrot.slane %v1143_v30, %v1150_v24  ;;  %v1158_v36 = vrot.slane %v1144_v31, %v1150_v24  ;;  %v1167_v37 = vrot.slane %v1159_v32, %v1150_v24  ;;  %v1174_v38 = vrot.slane %v1160_v34, %v1150_v24 }
 0x787   : > { %v1179_v39 = vcombine.low %v1151_v35, %v1158_v36  ;;  %v1468_v40 = vcombine.high %v1151_v35, %v1158_v36  ;;  %v1195_v41 = vcombine.low %v1167_v37, %v1174_v38  ;;  %v1469_v42 = vcombine.high %v1167_v37, %v1174_v38 }
 0x789   : > { %v1186_v43 = vrot.slane %v1179_v39, %v1118_v17  ;;  %v1194_v44 = vrot.slane %v1468_v40, %v1118_v17  ;;  %v1202_v45 = vrot.slane %v1195_v41, %v1118_v17  ;;  %v1210_v46 = vrot.slane %v1469_v42, %v1118_v17 }
 0x78b   : > { %v1212_v47 = vcombine.high %v1186_v43, %v1194_v44  ;;  %v1228_v48 = vcombine.high %v1202_v45, %v1210_v46  ;;  %v1211_v49 = vcombine.low %v1186_v43, %v1194_v44  ;;  %v1227_v50 = vcombine.low %v1202_v45, %v1210_v46 }
 0x78d   : > { %v1226_v51 = vrot.slane %v1212_v47, %v1150_v24  ;;  %v1242_v52 = vrot.slane %v1228_v48, %v1150_v24  ;;  %v1219_v33 = vrot.slane %v1211_v49, %v1150_v24  ;;  %v1235_v53 = vrot.slane %v1227_v50, %v1150_v24 }
 0x78f   : > { %v1245_v54 = vcombine.low %v1226_v51, %v1242_v52  ;;  %v1244_v55 = vcombine.high %v1219_v33, %v1235_v53  ;;  %v1243_v56 = vcombine.low %v1219_v33, %v1235_v53  ;;  %v1246_v57 = vcombine.high %v1226_v51, %v1242_v52 }
 0x791   : > { %1252 = vrot.lane.b32.xlu0 %v1245_v54, %s1800_s19  ;;  %1248 = vrot.lane.b32.xlu1 %v1244_v55, %s1801_s18  ;;  %s1803_s19 = smov [#allocation7]  }
 0x792   : > { %s1721_s18 = sshll.u32 %s1803_s19, 4  ;;  %s1722_s18 = int_to_ptr.vmem [resolvable:$false] %s1721_s18 }
 0x793   : > { %p1724_p4 = scmp.lt.s32.totalorder %s2081_s8, %s1722_s18 }
 0x795   : > { %1256 = vrot.lane.b32.xlu1 %v1246_v57, %s1802_s17  ;;  %s1723_s17 = scalar_lea.vmem %s1722_s18, 256 }
 0x796   : > { %p1725_p7 = scmp.lt.s32.totalorder %s1723_s17, %s1717_s16 }
 0x798   : > { %p1726_p8 = por %p1725_p7, %p1724_p4 }
 0x79a   : > { %p1727_p11 = pnand %p1726_p8, %p1720_p3 }
 0x803   : > { %v1249_v58 = vpop.permute.xlu1 %1248  ;;  %v1253_v59 = vpop.permute.xlu0 %1252 }
 0x804   : > { %v1259_v60 = vsel %vm509_vm2, %v1243_v56, %v1249_v58 }
 0x805   : > { %v1260_v62 = vsel %vm302_vm0, %v1259_v60, %v1253_v59 }
 0x807   : > { %v1257_v61 = vpop.permute.xlu1 %1256 }
 0x808   : > { %v1262_v63 = vsel %vm1261_vm4, %v1260_v62, %v1257_v61 }
 0x809   : > { %v1263_v0 = vpack.c.bf16 %v1262_v63, %v1262_v63 }
 0x80b   : > { %1558 = vmatmul.mubr.msk.bf16.vlgmr.msra.gmra.mrb[12].mxu0 %vm1303_vm5, %v1263_v0 }
 0x8de   : > { %v1341_v2 = vpop.f32.mrb[12].mxu0 }
 0x8df   : > { %v1342_v3 = vadd.f32 %v1470_v1, %v1341_v2  ;;  %v1559_v4 = vpop.f32.mrb[13].mxu0 }
 0x8e0   : > { %v1344_v5 = vpop.f32.mrb[14].mxu0 }
 0x8e1   : > { %v1560_v6 = vpop.f32.mrb[15].mxu0  ;;  %1347 = vst.msk [vmem:[%s295_s29] sm:$0xff] %vm302_vm0, %v1342_v3 }
 0x8e2   : > { %1730 = shalt.err (!%p1727_p11)
}
 0x8e3   : > { %s1731_s20 = scalar_lea.hbm %s2079_s14, 128  ;;  %s1735_s22 = scalar_lea.hbm %s2129_s7, 256 }
 0x8e4   : > { %p1732_p13 = scmp.ne.s32.totalorder %s2079_s14, %s1731_s20  ;;  %p1736_p5 = scmp.lt.u32.totalorder %s2079_s14, %s2129_s7 }
 0x8e5   : > { %p1737_p9 = scmp.lt.u32.totalorder %s1735_s22, %s1731_s20  ;;  %p1739_p12 = scmp.lt.u32.totalorder %s1731_s20, %s2079_s14 }
 0x8e6   : > { %p1733_p0 = pnand %p1732_p13, %p2142_p1 }
 0x8e7   : > { %p1738_p10 = por %p1737_p9, %p1736_p5 }
 0x8e8   : > { %p1734_p6 = pneg %p1733_p0 }
 0x8e9   : > { %p1740_p2 = por %p1739_p12, %p1738_p10 }
 0x8eb   : > { %p1741_p3 = pnand %p1740_p2, %p1734_p6 }
 0x8ed   : > { %1744 = shalt.err (!%p1741_p3)
}
 0x8ee   : > { %1569 = dma.vmem_to_hbm [thread:$0]  (%p2142_p1), %s2081_s8, 128, %s2079_s14, %s1349_s28  }
 0x8ef PF: > { %p1586_p4 = scmp.ge.s32.totalorder %s1787_s27, 2  ;;  %s1374_s9 = sand.u32 1, %s1775_s24  }
 0x8f0   : > { %p2143_p7 = scmp.ne.s32.totalorder %s2134_s12, 0  ;;  %s1375_s15 = scalar_lea.sflag [#allocation4], %s1374_s9 }
 0x8f2   : > { %p1579_p8 = pnand %p1586_p4, %p2143_p7 }
 0x8f4   : > { %1770 = dma.done.wait (!%p1579_p8), %s1375_s15, 128  }
 0x8f5   : > { %1772 = vsyncadd (!%p1579_p8), %s1375_s15, 4294967168  ;;  %p19_p11 = scmp.ge.s32.totalorder %s1869_s30, 4   ;;  %s2144_s24 = smov %s1779_s25 }
 0x8f6   : > { %s2145_s25 = smov %s1783_s26  ;;  %s2146_s26 = smov %s1880_s10 }
 0x8f7   : > { %s2147_s27 = smov %s1869_s30  ;;  %21 = sbr.rel (!%p19_p11) target bundleno = 5 (0x5), region = 92 }
 0x8fe   :  { %1380 = vsyncpa [#allocation3], 1 }
 0x8ff   :  { %1382 = vsyncpa [#allocation3 + $0x1], 1 }
 0x900   :  { %1383 = vsyncpa [#allocation6], 1 }
 0x901   :  { %1384 = vsyncpa [#allocation4], 1 }
 0x902   :  { %1386 = vsyncpa [#allocation4 + $0x1], 1 }

</bundles_post_ra>
